<compile_context>
chip_gen: v6e
topology: v6e:2x2x1
jax: 0.10.0
libtpu: 0.0.40
codegen_flags: <defaults>
</compile_context>

<pallas_src>
import jax
import jax.numpy as jnp
from jax.experimental import pallas as pl
from jax.experimental.pallas import tpu as pltpu


def _round_up(n, m):
    return ((n + m - 1) // m) * m


def _pad2(a, rows, cols):
    r, c = a.shape
    return jnp.pad(a, ((0, rows - r), (0, cols - c)))


def vae_kernel(x_ref, eps_ref,
               w1_ref, b1_ref,      # img_2hid
               w23_ref, b23_ref,    # fused hid_2mu | hid_sigma
               w4_ref, b4_ref,      # z_2hid
               w5_ref, b5_ref,      # hid_2img
               xrec_ref, musig_ref):
    zp = eps_ref.shape[-1]           # padded latent width (static)

    x = x_ref[...]                   # bf16 (batch_tile, Dp)
    eps = eps_ref[...]               # f32  (batch_tile, Zp)

    # ----- encode -----
    h = jnp.dot(x, w1_ref[...], preferred_element_type=jnp.float32) + b1_ref[...]
    h = jnp.maximum(h, 0.0)                                   # ReLU (f32, VPU)

    # fused mu|sigma projection -> lane-dense (batch_tile, 2*Zp) slab
    ms = jnp.dot(h.astype(jnp.bfloat16), w23_ref[...],
                 preferred_element_type=jnp.float32) + b23_ref[...]
    mu = ms[:, :zp]
    sigma = ms[:, zp:]

    # ----- reparameterization (f32) -----
    z = mu + sigma * eps

    # ----- decode -----
    hd = jnp.dot(z.astype(jnp.bfloat16), w4_ref[...],
                 preferred_element_type=jnp.float32) + b4_ref[...]
    hd = jnp.maximum(hd, 0.0)                                 # ReLU

    logits = jnp.dot(hd.astype(jnp.bfloat16), w5_ref[...],
                     preferred_element_type=jnp.float32) + b5_ref[...]
    xrec = jax.nn.sigmoid(logits)                             # EUP, f32

    xrec_ref[...] = xrec.astype(xrec_ref.dtype)
    musig_ref[...] = ms.astype(musig_ref.dtype)


def vae_forward(x, eps, params, *, batch_tile=128):
    B, D = x.shape
    Z = eps.shape[1]
    H = params["w1"].shape[1]
    assert batch_tile % 8 == 0

    # Padded (TPU-friendly) dimensions.
    Bp = _round_up(B, batch_tile)
    Dp = _round_up(D, 128)
    Hp = _round_up(H, 128)
    Zp = _round_up(Z, 64)            # 2*Zp is a multiple of 128 -> lane-dense output

    # Activations: x only feeds the MXU -> bf16 (halves input DMA); eps stays f32.
    xp = _pad2(x, Bp, Dp).astype(jnp.bfloat16)
    epsp = _pad2(eps, Bp, Zp)

    # Weights: bf16 matmul operands; biases stay f32 (added post-accumulation).
    w1 = _pad2(params["w1"], Dp, Hp).astype(jnp.bfloat16)
    b1 = _pad2(params["b1"], 1, Hp)
    w23 = jnp.concatenate([_pad2(params["w2"], Hp, Zp),
                           _pad2(params["w3"], Hp, Zp)], axis=1).astype(jnp.bfloat16)
    b23 = jnp.concatenate([_pad2(params["b2"], 1, Zp),
                           _pad2(params["b3"], 1, Zp)], axis=1)
    w4 = _pad2(params["w4"], Zp, Hp).astype(jnp.bfloat16)
    b4 = _pad2(params["b4"], 1, Hp)
    w5 = _pad2(params["w5"], Hp, Dp).astype(jnp.bfloat16)
    b5 = _pad2(params["b5"], 1, Dp)

    grid = (Bp // batch_tile,)

    full = lambda shape: pl.BlockSpec(shape, lambda i: (0,) * len(shape))
    row = lambda cols: pl.BlockSpec((batch_tile, cols), lambda i: (i, 0))

    in_specs = [
        row(Dp),                     # x    (tiled over batch)
        row(Zp),                     # eps  (tiled over batch)
        full((Dp, Hp)), full((1, Hp)),          # w1, b1
        full((Hp, 2 * Zp)), full((1, 2 * Zp)),  # w23, b23 (fused mu|sigma)
        full((Zp, Hp)), full((1, Hp)),          # w4, b4
        full((Hp, Dp)), full((1, Dp)),          # w5, b5
    ]
    out_specs = [
        row(Dp),                     # x_reconstructed (lane-dense)
        row(2 * Zp),                 # fused mu|sigma slab (lane-dense)
    ]
    out_shape = [
        jax.ShapeDtypeStruct((Bp, Dp), jnp.float32),
        jax.ShapeDtypeStruct((Bp, 2 * Zp), jnp.float32),
    ]

    inputs = (xp, epsp, w1, b1, w23, b23, w4, b4, w5, b5)
    flops = 2 * Bp * (Dp * Hp + Hp * 2 * Zp + Zp * Hp + Hp * Dp)
    bytes_in = sum(int(a.size) * a.dtype.itemsize for a in inputs)
    bytes_out = Bp * Dp * 4 + Bp * 2 * Zp * 4
    cost = pl.CostEstimate(flops=flops,
                           transcendentals=Bp * Dp,          # sigmoid exp
                           bytes_accessed=bytes_in + bytes_out)

    xrec_p, musig_p = pl.pallas_call(
        vae_kernel,
        grid=grid,
        in_specs=in_specs,
        out_specs=out_specs,
        out_shape=out_shape,
        cost_estimate=cost,
        compiler_params=pltpu.CompilerParams(
            dimension_semantics=("parallel",)),
    )(*inputs)

    # Strip padding / split the fused latent slab.
    xrec = xrec_p[:B, :D]
    mu = musig_p[:B, :Z]
    sigma = musig_p[:B, Zp:Zp + Z]
    return xrec, mu, sigma


def init_params(key, input_dim, h_dim, z_dim):
    """Deterministic synthetic init. Weights stored (in_features, out_features)."""
    ks = jax.random.split(key, 10)

    def lin(kw, kb, fan_in, fan_out):
        bound = 1.0 / jnp.sqrt(fan_in)
        w = jax.random.uniform(kw, (fan_in, fan_out), jnp.float32, -bound, bound)
        b = jax.random.uniform(kb, (1, fan_out), jnp.float32, -bound, bound)
        return w, b

    w1, b1 = lin(ks[0], ks[1], input_dim, h_dim)   # img_2hid
    w2, b2 = lin(ks[2], ks[3], h_dim, z_dim)       # hid_2mu
    w3, b3 = lin(ks[4], ks[5], h_dim, z_dim)       # hid_sigma
    w4, b4 = lin(ks[6], ks[7], z_dim, h_dim)       # z_2hid
    w5, b5 = lin(ks[8], ks[9], h_dim, input_dim)   # hid_2img
    return dict(w1=w1, b1=b1, w2=w2, b2=b2, w3=w3, b3=b3,
                w4=w4, b4=b4, w5=w5, b5=b5)


def vae_reference(x, eps, p):
    """Pure-JAX f32 reference of the PyTorch forward, for correctness checking."""
    h = jnp.maximum(x @ p["w1"] + p["b1"], 0.0)
    mu = h @ p["w2"] + p["b2"]
    sigma = h @ p["w3"] + p["b3"]
    z = mu + sigma * eps
    hd = jnp.maximum(z @ p["w4"] + p["b4"], 0.0)
    xrec = jax.nn.sigmoid(hd @ p["w5"] + p["b5"])
    return xrec, mu, sigma


if __name__ == "__main__":
    # Small shapes consistent with the module (h_dim=200, z_dim=20 defaults).
    B, INPUT_DIM, H_DIM, Z_DIM = 8, 256, 200, 20

    key = jax.random.PRNGKey(0)
    k_x, k_eps, k_p = jax.random.split(key, 3)

    x = jax.random.uniform(k_x, (B, INPUT_DIM), jnp.float32)   # "image" batch
    eps = jax.random.normal(k_eps, (B, Z_DIM), jnp.float32)    # torch.randn_like(sigma)
    params = init_params(k_p, INPUT_DIM, H_DIM, Z_DIM)

    xrec, mu, sigma = vae_forward(x, eps, params, batch_tile=128)
    jax.block_until_ready((xrec, mu, sigma))

    assert xrec.shape == (B, INPUT_DIM)
    assert mu.shape == (B, Z_DIM) and sigma.shape == (B, Z_DIM)

    # Check against pure-JAX f32 reference (bf16 matmul operands -> loose tolerance).
    xrec_r, mu_r, sigma_r = vae_reference(x, eps, params)
    assert jnp.allclose(xrec, xrec_r, atol=5e-2, rtol=5e-2), \
        float(jnp.max(jnp.abs(xrec - xrec_r)))
    assert jnp.allclose(mu, mu_r, atol=5e-2, rtol=5e-2), \
        float(jnp.max(jnp.abs(mu - mu_r)))
    assert jnp.allclose(sigma, sigma_r, atol=5e-2, rtol=5e-2), \
        float(jnp.max(jnp.abs(sigma - sigma_r)))

    print("KERNEL_OK")
</pallas_src>

<mosaic_0001>
module attributes {stable_mosaic.version = 11 : i64} {
  func.func @vae_kernel(%arg0: i32, %arg1: memref<128x256xbf16, #tpu.memory_space<vmem>>, %arg2: memref<128x64xf32, #tpu.memory_space<vmem>>, %arg3: memref<256x256xbf16, #tpu.memory_space<vmem>>, %arg4: memref<1x256xf32, #tpu.memory_space<vmem>>, %arg5: memref<256x128xbf16, #tpu.memory_space<vmem>>, %arg6: memref<1x128xf32, #tpu.memory_space<vmem>>, %arg7: memref<64x256xbf16, #tpu.memory_space<vmem>>, %arg8: memref<1x256xf32, #tpu.memory_space<vmem>>, %arg9: memref<256x256xbf16, #tpu.memory_space<vmem>>, %arg10: memref<1x256xf32, #tpu.memory_space<vmem>>, %arg11: memref<128x256xf32, #tpu.memory_space<vmem>>, %arg12: memref<128x128xf32, #tpu.memory_space<vmem>>) attributes {dimension_semantics = [#tpu.dimension_semantics<parallel>], iteration_bounds = array<i64: 1>, scalar_prefetch = 0 : i64, scratch_operands = 0 : i64, tpu.core_type = #tpu.core_type<tc>, window_params = [{transform_indices = @transform_0, window_bounds = array<i64: 128, 256>}, {transform_indices = @transform_1, window_bounds = array<i64: 128, 64>}, {pipeline_mode = #tpu.pipeline_mode<synchronous>, transform_indices = @transform_2, window_bounds = array<i64: 256, 256>}, {pipeline_mode = #tpu.pipeline_mode<synchronous>, transform_indices = @transform_3, window_bounds = array<i64: 1, 256>}, {pipeline_mode = #tpu.pipeline_mode<synchronous>, transform_indices = @transform_4, window_bounds = array<i64: 256, 128>}, {pipeline_mode = #tpu.pipeline_mode<synchronous>, transform_indices = @transform_5, window_bounds = array<i64: 1, 128>}, {pipeline_mode = #tpu.pipeline_mode<synchronous>, transform_indices = @transform_6, window_bounds = array<i64: 64, 256>}, {pipeline_mode = #tpu.pipeline_mode<synchronous>, transform_indices = @transform_7, window_bounds = array<i64: 1, 256>}, {pipeline_mode = #tpu.pipeline_mode<synchronous>, transform_indices = @transform_8, window_bounds = array<i64: 256, 256>}, {pipeline_mode = #tpu.pipeline_mode<synchronous>, transform_indices = @transform_9, window_bounds = array<i64: 1, 256>}, {transform_indices = @transform_10, window_bounds = array<i64: 128, 256>}, {transform_indices = @transform_11, window_bounds = array<i64: 128, 128>}]} {
    %c0 = arith.constant 0 : index
    %c0_0 = arith.constant 0 : index
    %0 = vector.load %arg1[%c0, %c0_0] : memref<128x256xbf16, #tpu.memory_space<vmem>>, vector<128x256xbf16>
    %c0_1 = arith.constant 0 : index
    %c0_2 = arith.constant 0 : index
    %1 = vector.load %arg2[%c0_1, %c0_2] : memref<128x64xf32, #tpu.memory_space<vmem>>, vector<128x64xf32>
    %c0_3 = arith.constant 0 : index
    %c0_4 = arith.constant 0 : index
    %2 = vector.load %arg3[%c0_3, %c0_4] : memref<256x256xbf16, #tpu.memory_space<vmem>>, vector<256x256xbf16>
    %cst = arith.constant dense<0.000000e+00> : vector<128x256xf32>
    %3 = tpu.matmul %0, %2, %cst {dimension_numbers = #tpu.dot_dimension_numbers<[1], [0], [0], [1], [0, 0, 1, 1], [], []>} : vector<128x256xbf16>, vector<256x256xbf16>, vector<128x256xf32> -> vector<128x256xf32>
    %c0_5 = arith.constant 0 : index
    %c0_6 = arith.constant 0 : index
    %4 = vector.load %arg4[%c0_5, %c0_6] : memref<1x256xf32, #tpu.memory_space<vmem>>, vector<1x256xf32>
    %5 = vector.broadcast %4 : vector<1x256xf32> to vector<128x256xf32>
    %6 = arith.addf %3, %5 : vector<128x256xf32>
    %cst_7 = arith.constant 0.000000e+00 : f32
    %7 = vector.broadcast %cst_7 : f32 to vector<128x256xf32>
    %8 = arith.maximumf %6, %7 : vector<128x256xf32>
    %9 = arith.truncf %8 : vector<128x256xf32> to vector<128x256xbf16>
    %c0_8 = arith.constant 0 : index
    %c0_9 = arith.constant 0 : index
    %10 = vector.load %arg5[%c0_8, %c0_9] : memref<256x128xbf16, #tpu.memory_space<vmem>>, vector<256x128xbf16>
    %cst_10 = arith.constant dense<0.000000e+00> : vector<128x128xf32>
    %11 = tpu.matmul %9, %10, %cst_10 {dimension_numbers = #tpu.dot_dimension_numbers<[1], [0], [0], [1], [0, 0, 1, 1], [], []>} : vector<128x256xbf16>, vector<256x128xbf16>, vector<128x128xf32> -> vector<128x128xf32>
    %c0_11 = arith.constant 0 : index
    %c0_12 = arith.constant 0 : index
    %12 = vector.load %arg6[%c0_11, %c0_12] : memref<1x128xf32, #tpu.memory_space<vmem>>, vector<1x128xf32>
    %13 = vector.broadcast %12 : vector<1x128xf32> to vector<128x128xf32>
    %14 = arith.addf %11, %13 : vector<128x128xf32>
    %15 = vector.extract_strided_slice %14 {offsets = [0, 0], sizes = [128, 64], strides = [1, 1]} : vector<128x128xf32> to vector<128x64xf32>
    %16 = vector.extract_strided_slice %14 {offsets = [0, 64], sizes = [128, 64], strides = [1, 1]} : vector<128x128xf32> to vector<128x64xf32>
    %17 = arith.mulf %16, %1 : vector<128x64xf32>
    %18 = arith.addf %15, %17 : vector<128x64xf32>
    %19 = arith.truncf %18 : vector<128x64xf32> to vector<128x64xbf16>
    %c0_13 = arith.constant 0 : index
    %c0_14 = arith.constant 0 : index
    %20 = vector.load %arg7[%c0_13, %c0_14] : memref<64x256xbf16, #tpu.memory_space<vmem>>, vector<64x256xbf16>
    %cst_15 = arith.constant dense<0.000000e+00> : vector<128x256xf32>
    %21 = tpu.matmul %19, %20, %cst_15 {dimension_numbers = #tpu.dot_dimension_numbers<[1], [0], [0], [1], [0, 0, 1, 1], [], []>} : vector<128x64xbf16>, vector<64x256xbf16>, vector<128x256xf32> -> vector<128x256xf32>
    %c0_16 = arith.constant 0 : index
    %c0_17 = arith.constant 0 : index
    %22 = vector.load %arg8[%c0_16, %c0_17] : memref<1x256xf32, #tpu.memory_space<vmem>>, vector<1x256xf32>
    %23 = vector.broadcast %22 : vector<1x256xf32> to vector<128x256xf32>
    %24 = arith.addf %21, %23 : vector<128x256xf32>
    %cst_18 = arith.constant 0.000000e+00 : f32
    %25 = vector.broadcast %cst_18 : f32 to vector<128x256xf32>
    %26 = arith.maximumf %24, %25 : vector<128x256xf32>
    %27 = arith.truncf %26 : vector<128x256xf32> to vector<128x256xbf16>
    %c0_19 = arith.constant 0 : index
    %c0_20 = arith.constant 0 : index
    %28 = vector.load %arg9[%c0_19, %c0_20] : memref<256x256xbf16, #tpu.memory_space<vmem>>, vector<256x256xbf16>
    %cst_21 = arith.constant dense<0.000000e+00> : vector<128x256xf32>
    %29 = tpu.matmul %27, %28, %cst_21 {dimension_numbers = #tpu.dot_dimension_numbers<[1], [0], [0], [1], [0, 0, 1, 1], [], []>} : vector<128x256xbf16>, vector<256x256xbf16>, vector<128x256xf32> -> vector<128x256xf32>
    %c0_22 = arith.constant 0 : index
    %c0_23 = arith.constant 0 : index
    %30 = vector.load %arg10[%c0_22, %c0_23] : memref<1x256xf32, #tpu.memory_space<vmem>>, vector<1x256xf32>
    %31 = vector.broadcast %30 : vector<1x256xf32> to vector<128x256xf32>
    %32 = arith.addf %29, %31 : vector<128x256xf32>
    %33 = arith.negf %32 : vector<128x256xf32>
    %34 = math.exp %33 : vector<128x256xf32>
    %cst_24 = arith.constant 1.000000e+00 : f32
    %35 = vector.broadcast %cst_24 : f32 to vector<128x256xf32>
    %36 = arith.addf %35, %34 : vector<128x256xf32>
    %37 = arith.divf %35, %36 : vector<128x256xf32>
    %c0_25 = arith.constant 0 : index
    %c0_26 = arith.constant 0 : index
    %38 = vector.load %arg11[%c0_25, %c0_26] : memref<128x256xf32, #tpu.memory_space<vmem>>, vector<128x256xf32>
    tpu.vector_store %arg11[%c0_25, %c0_26], %37 {strides = array<i32>} : memref<128x256xf32, #tpu.memory_space<vmem>>, vector<128x256xf32>,
    %c0_27 = arith.constant 0 : index
    %c0_28 = arith.constant 0 : index
    %39 = vector.load %arg12[%c0_27, %c0_28] : memref<128x128xf32, #tpu.memory_space<vmem>>, vector<128x128xf32>
    tpu.vector_store %arg12[%c0_27, %c0_28], %14 {strides = array<i32>} : memref<128x128xf32, #tpu.memory_space<vmem>>, vector<128x128xf32>,
    return
  }
  func.func @transform_0(%arg0: i32) -> (i32, i32) {
    %c0_i32 = arith.constant 0 : i32
    %c0_i32_0 = arith.constant 0 : i32
    return %arg0, %c0_i32 : i32, i32
  }
  func.func @transform_1(%arg0: i32) -> (i32, i32) {
    %c0_i32 = arith.constant 0 : i32
    %c0_i32_0 = arith.constant 0 : i32
    return %arg0, %c0_i32 : i32, i32
  }
  func.func @transform_2(%arg0: i32) -> (i32, i32) {
    %c0_i32 = arith.constant 0 : i32
    %c0_i32_0 = arith.constant 0 : i32
    %c0_i32_1 = arith.constant 0 : i32
    return %c0_i32, %c0_i32_0 : i32, i32
  }
  func.func @transform_3(%arg0: i32) -> (i32, i32) {
    %c0_i32 = arith.constant 0 : i32
    %c0_i32_0 = arith.constant 0 : i32
    %c0_i32_1 = arith.constant 0 : i32
    return %c0_i32, %c0_i32_0 : i32, i32
  }
  func.func @transform_4(%arg0: i32) -> (i32, i32) {
    %c0_i32 = arith.constant 0 : i32
    %c0_i32_0 = arith.constant 0 : i32
    %c0_i32_1 = arith.constant 0 : i32
    return %c0_i32, %c0_i32_0 : i32, i32
  }
  func.func @transform_5(%arg0: i32) -> (i32, i32) {
    %c0_i32 = arith.constant 0 : i32
    %c0_i32_0 = arith.constant 0 : i32
    %c0_i32_1 = arith.constant 0 : i32
    return %c0_i32, %c0_i32_0 : i32, i32
  }
  func.func @transform_6(%arg0: i32) -> (i32, i32) {
    %c0_i32 = arith.constant 0 : i32
    %c0_i32_0 = arith.constant 0 : i32
    %c0_i32_1 = arith.constant 0 : i32
    return %c0_i32, %c0_i32_0 : i32, i32
  }
  func.func @transform_7(%arg0: i32) -> (i32, i32) {
    %c0_i32 = arith.constant 0 : i32
    %c0_i32_0 = arith.constant 0 : i32
    %c0_i32_1 = arith.constant 0 : i32
    return %c0_i32, %c0_i32_0 : i32, i32
  }
  func.func @transform_8(%arg0: i32) -> (i32, i32) {
    %c0_i32 = arith.constant 0 : i32
    %c0_i32_0 = arith.constant 0 : i32
    %c0_i32_1 = arith.constant 0 : i32
    return %c0_i32, %c0_i32_0 : i32, i32
  }
  func.func @transform_9(%arg0: i32) -> (i32, i32) {
    %c0_i32 = arith.constant 0 : i32
    %c0_i32_0 = arith.constant 0 : i32
    %c0_i32_1 = arith.constant 0 : i32
    return %c0_i32, %c0_i32_0 : i32, i32
  }
  func.func @transform_10(%arg0: i32) -> (i32, i32) {
    %c0_i32 = arith.constant 0 : i32
    %c0_i32_0 = arith.constant 0 : i32
    return %arg0, %c0_i32 : i32, i32
  }
  func.func @transform_11(%arg0: i32) -> (i32, i32) {
    %c0_i32 = arith.constant 0 : i32
    %c0_i32_0 = arith.constant 0 : i32
    return %arg0, %c0_i32 : i32, i32
  }
}

</mosaic_0001>

<bundles_post_ra>
// kernel: tpu_custom_call.1
= control target key start
LH: loop header
LB: loop body
LE: loop exit
PB: predicated region body
PF: predicated region fallthrough
CT: control target
= control target key end

     0   :  { %17 = vsyncpa [#allocation3], 0  ;;  %s3022_s0 = inlined_call_operand.vmem [shape: bf16[128,256], index: 0, kind: input, shape index: {}]   ;;  %s3023_s1 = inlined_call_operand.vmem [shape: f32[128,64], index: 1, kind: input, shape index: {}]   ;;  %s3024_s2 = inlined_call_operand.hbm [shape: bf16[256,256], index: 2, kind: input, shape index: {}]   ;;  %s3025_s3 = inlined_call_operand.vmem [shape: f32[1,256], index: 3, kind: input, shape index: {}]   ;;  %s3026_s4 = inlined_call_operand.hbm [shape: bf16[256,128], index: 4, kind: input, shape index: {}]   ;;  %s3027_s5 = inlined_call_operand.vmem [shape: f32[1,128], index: 5, kind: input, shape index: {}]   ;;  %s3028_s6 = inlined_call_operand.vmem [shape: bf16[64,256], index: 6, kind: input, shape index: {}]   ;;  %s3029_s7 = inlined_call_operand.vmem [shape: f32[1,256], index: 7, kind: input, shape index: {}]   ;;  %s3030_s8 = inlined_call_operand.hbm [shape: bf16[256,256], index: 8, kind: input, shape index: {}]   ;;  %s3031_s9 = inlined_call_operand.vmem [shape: f32[1,256], index: 9, kind: input, shape index: {}]   ;;  %s3032_s10 = inlined_call_operand.hbm [shape: f32[128,256], index: 10, kind: output, shape index: {0}]   ;;  %s3033_s11 = inlined_call_operand.hbm [shape: f32[128,128], index: 11, kind: output, shape index: {1}]  }
   0x1   :  { %18 = vsyncpa [#allocation6], 0 }
   0x2   :  { %19 = vsyncpa [#allocation4], 0 }
   0x3   :  { %20 = vsyncpa [#allocation10], 0  ;;  %s2432_s17 = smov [#allocation5]  }
   0x4   :  { %s44_s18 = sshll.u32 %s2432_s17, 4  ;;  %s45_s18 = int_to_ptr.vmem [resolvable:$true] %s44_s18 }
   0x5   :  { %s2332_s19 = scalar_lea.vmem %s45_s18, 2048  ;;  %p2337_p1 = scmp.lt.s32.totalorder %s45_s18, %s45_s18 }
   0x6   :  { %p2333_p0 = scmp.ne.s32.totalorder %s45_s18, %s2332_s19  ;;  %p2338_p2 = scmp.lt.s32.totalorder %s2332_s19, %s2332_s19 }
   0x8   :  { %p2339_p3 = por %p2338_p2, %p2337_p1 }
   0xa   :  { %p2340_p4 = pnand %p2339_p3, %p2333_p0 }
   0xc   :  { %2343 = shalt.err (!%p2340_p4)
}
   0xd   :  { %s2433_s20 = smov 64   ;;  %s2434_s21 = smov 4  }
   0xe   :  { %50 = dma.hbm_to_vmem [thread:$0]  %s3026_s4, 2048, %s45_s18, [#allocation6], %s2433_s20, %s2433_s20, %s2434_s21  }
   0xf   :  { %s2435_s24 = smov [#allocation2]  }
  0x10   :  { %s30_s25 = sshll.u32 %s2435_s24, 4  ;;  %s31_s25 = int_to_ptr.vmem [resolvable:$true] %s30_s25 }
  0x11   :  { %s2352_s26 = scalar_lea.vmem %s31_s25, 4096  ;;  %p2357_p6 = scmp.lt.s32.totalorder %s31_s25, %s31_s25 }
  0x12   :  { %p2353_p5 = scmp.ne.s32.totalorder %s31_s25, %s2352_s26  ;;  %p2358_p7 = scmp.lt.s32.totalorder %s2352_s26, %s2352_s26 }
  0x14   :  { %p2359_p8 = por %p2358_p7, %p2357_p6 }
  0x16   :  { %p2360_p9 = pnand %p2359_p8, %p2353_p5 }
  0x18   :  { %2363 = shalt.err (!%p2360_p9)
}
  0x19   :  { %s2436_s27 = smov 128   ;;  %s2437_s28 = smov 8  }
  0x1a   :  { %36 = dma.hbm_to_vmem [thread:$0]  %s3024_s2, 4096, %s31_s25, [#allocation3], %s2436_s27, %s2436_s27, %s2437_s28  }
  0x1b   :  { %s2438_s4 = smov [#allocation7]  }
  0x1c   :  { %s62_s12 = sshll.u32 %s2438_s4, 4  ;;  %s63_s12 = int_to_ptr.vmem [resolvable:$true] %s62_s12 }
  0x1d   :  { %s2372_s13 = scalar_lea.vmem %s63_s12, 4096  ;;  %p2377_p11 = scmp.lt.s32.totalorder %s63_s12, %s63_s12 }
  0x1e   :  { %p2373_p10 = scmp.ne.s32.totalorder %s63_s12, %s2372_s13  ;;  %p2378_p12 = scmp.lt.s32.totalorder %s2372_s13, %s2372_s13 }
  0x20   :  { %p2379_p13 = por %p2378_p12, %p2377_p11 }
  0x22   :  { %p2380_p0 = pnand %p2379_p13, %p2373_p10 }
  0x24   :  { %2383 = shalt.err (!%p2380_p0)
}
  0x25   :  { %68 = dma.hbm_to_vmem [thread:$0]  %s3030_s8, 4096, %s63_s12, [#allocation6], %s2436_s27, %s2436_s27, %s2437_s28  }
  0x26   :  { %2424 = dma.done.wait [#allocation3], 4096  }
  0x27   :  { %2425 = vsyncadd [#allocation3], 4294963200 }
  0x28   :  { %2426 = dma.done.wait [#allocation6], 6144  }
  0x29   :  { %2427 = vsyncadd [#allocation6], 4294961152  ;;  %v2048_v0 = vld [vmem:[#allocation2 + $0x74] ss:$8 sps:$4 sm:$0xff]   ;;  %v2050_v1 = vld [vmem:[#allocation2 + $0x70] ss:$8 sps:$4 sm:$0xff]  }
  0x2a   :  { %397 = vmatprep.subr.bf16.mxu0 %v2048_v0  ;;  %v2051_v2 = vld [vmem:[#allocation2 + $0x64] ss:$8 sps:$4 sm:$0xff]   ;;  %v2053_v3 = vld [vmem:[#allocation2 + $0x60] ss:$8 sps:$4 sm:$0xff]   ;;  %v2054_v4 = vld [vmem:[#allocation2 + $0x54] ss:$8 sps:$4 sm:$0xff]  }
  0x2b   :  { %398 = vmatpush1.bf16.msra.mxu0 %v2050_v1  ;;  %v2056_v5 = vld [vmem:[#allocation2 + $0x50] ss:$8 sps:$4 sm:$0xff]   ;;  %v2057_v6 = vld [vmem:[#allocation2 + $0x44] ss:$8 sps:$4 sm:$0xff]   ;;  %v2059_v7 = vld [vmem:[#allocation2 + $0x40] ss:$8 sps:$4 sm:$0xff]  }
  0x2c   :  { %399 = vmatprep.subr.bf16.mxu0 %v2051_v2  ;;  %v2060_v8 = vld [vmem:[#allocation2 + $0x34] ss:$8 sps:$4 sm:$0xff]   ;;  %v2062_v9 = vld [vmem:[#allocation2 + $0x30] ss:$8 sps:$4 sm:$0xff]   ;;  %v2063_v10 = vld [vmem:[#allocation2 + $0x24] ss:$8 sps:$4 sm:$0xff]  }
  0x2d   :  { %v2065_v11 = vld [vmem:[#allocation2 + $0x20] ss:$8 sps:$4 sm:$0xff]   ;;  %v2066_v12 = vld [vmem:[#allocation2 + $0x14] ss:$8 sps:$4 sm:$0xff]   ;;  %v2098_v13 = vld [vmem:[%s3022_s0 + $0x4] ss:$8 sps:$4 sm:$0xff]  }
  0x2e   :  { %v2068_v14 = vld [vmem:[#allocation2 + $0x10] ss:$8 sps:$4 sm:$0xff]   ;;  %v2069_v15 = vld [vmem:[#allocation2 + $0x4] ss:$8 sps:$4 sm:$0xff]   ;;  %429 = vmatprep.mubr.bf16.mxu0 %v2098_v13  ;;  %v2071_v16 = vld [vmem:[#allocation2] ss:$8 sps:$4 sm:$0xff]  }
  0x2f   :  { %400 = vmatpush1.bf16.msra.mxu0 %v2053_v3  ;;  %v2072_v17 = vld [vmem:[#allocation2 + $0xf4] ss:$8 sps:$4 sm:$0xff]   ;;  %v2074_v18 = vld [vmem:[#allocation2 + $0xf0] ss:$8 sps:$4 sm:$0xff]   ;;  %v2075_v19 = vld [vmem:[#allocation2 + $0xe4] ss:$8 sps:$4 sm:$0xff]  }
  0x30   :  { %401 = vmatprep.subr.bf16.mxu0 %v2054_v4  ;;  %v2120_v20 = vld [vmem:[#allocation5 + $0x78] sm:$0xff]   ;;  %v2077_v21 = vld [vmem:[#allocation2 + $0xe0] ss:$8 sps:$4 sm:$0xff]   ;;  %v2122_v24 = vld [vmem:[#allocation5 + $0x70] sm:$0xff]   ;;  %vm1018_vm0 = vcmask 523264  }
  0x31   :  { %v2121_v22 = vld [vmem:[#allocation5 + $0x38] sm:$0xff]   ;;  %1940 = vmatprep.subr.bf16.mxu1 %v2120_v20  ;;  %v2123_v25 = vld [vmem:[#allocation5 + $0x30] sm:$0xff]   ;;  %v2124_v26 = vld [vmem:[#allocation5 + $0x68] sm:$0xff]  }
  0x32   :  { %v2078_v23 = vld [vmem:[#allocation2 + $0xd4] ss:$8 sps:$4 sm:$0xff]   ;;  %1941 = vmatpush3.bf16.msra.mxu1 %v2121_v22  ;;  %v2080_v27 = vld [vmem:[#allocation2 + $0xd0] ss:$8 sps:$4 sm:$0xff]   ;;  %v2081_v28 = vld [vmem:[#allocation2 + $0xc4] ss:$8 sps:$4 sm:$0xff]  }
  0x33   :  { %402 = vmatpush1.bf16.msra.mxu0 %v2056_v5  ;;  %1942 = vmatprep.subr.bf16.mxu1 %v2122_v24  ;;  %v2125_v29 = vld [vmem:[#allocation5 + $0x28] sm:$0xff]   ;;  %v2126_v30 = vld [vmem:[#allocation5 + $0x60] sm:$0xff]   ;;  %v2084_v33 = vld [vmem:[#allocation2 + $0xb4] ss:$8 sps:$4 sm:$0xff]  }
  0x34   :  { %403 = vmatprep.subr.bf16.mxu0 %v2057_v6  ;;  %v2083_v31 = vld [vmem:[#allocation2 + $0xc0] ss:$8 sps:$4 sm:$0xff]   ;;  %v2128_v34 = vld [vmem:[#allocation5 + $0x58] sm:$0xff]   ;;  %v2087_v37 = vld [vmem:[#allocation2 + $0xa4] ss:$8 sps:$4 sm:$0xff]  }
  0x35   :  { %v2127_v32 = vld [vmem:[#allocation5 + $0x20] sm:$0xff]   ;;  %v2086_v35 = vld [vmem:[#allocation2 + $0xb0] ss:$8 sps:$4 sm:$0xff]   ;;  %v2090_v39 = vld [vmem:[#allocation2 + $0x94] ss:$8 sps:$4 sm:$0xff]  }
  0x36   :  { %1943 = vmatpush3.bf16.msra.mxu1 %v2123_v25  ;;  %v2129_v36 = vld [vmem:[#allocation5 + $0x18] sm:$0xff]   ;;  %v2089_v38 = vld [vmem:[#allocation2 + $0xa0] ss:$8 sps:$4 sm:$0xff]   ;;  %v2093_v41 = vld [vmem:[#allocation2 + $0x84] ss:$8 sps:$4 sm:$0xff]  }
  0x37   :  { %404 = vmatpush1.bf16.msra.mxu0 %v2059_v7  ;;  %1944 = vmatprep.subr.bf16.mxu1 %v2124_v26  ;;  %v2092_v40 = vld [vmem:[#allocation2 + $0x90] ss:$8 sps:$4 sm:$0xff]   ;;  %v2095_v42 = vld [vmem:[#allocation2 + $0x80] ss:$8 sps:$4 sm:$0xff]   ;;  %v2099_v44 = vld [vmem:[%s3022_s0 + $0x14] ss:$8 sps:$4 sm:$0xff]  }
  0x38   :  { %405 = vmatprep.subr.bf16.mxu0 %v2060_v8  ;;  %v2096_v43 = vld [vmem:[%s3022_s0] ss:$8 sps:$4 sm:$0xff]   ;;  %v2101_v45 = vld [vmem:[%s3022_s0 + $0x10] ss:$8 sps:$4 sm:$0xff]   ;;  %v2102_v46 = vld [vmem:[%s3022_s0 + $0x24] ss:$8 sps:$4 sm:$0xff]  }
  0x39   :  { %v2104_v47 = vld [vmem:[%s3022_s0 + $0x20] ss:$8 sps:$4 sm:$0xff]   ;;  %v2105_v48 = vld [vmem:[%s3022_s0 + $0x34] ss:$8 sps:$4 sm:$0xff]   ;;  %v2107_v49 = vld [vmem:[%s3022_s0 + $0x30] ss:$8 sps:$4 sm:$0xff]  }
  0x3a   :  { %1945 = vmatpush3.bf16.msra.mxu1 %v2125_v29  ;;  %v2108_v50 = vld [vmem:[%s3022_s0 + $0x44] ss:$8 sps:$4 sm:$0xff]   ;;  %v2110_v51 = vld [vmem:[%s3022_s0 + $0x40] ss:$8 sps:$4 sm:$0xff]   ;;  %v2111_v52 = vld [vmem:[%s3022_s0 + $0x54] ss:$8 sps:$4 sm:$0xff]  }
  0x3b   :  { %406 = vmatpush1.bf16.msra.mxu0 %v2062_v9  ;;  %1946 = vmatprep.subr.bf16.mxu1 %v2126_v30  ;;  %v2113_v53 = vld [vmem:[%s3022_s0 + $0x50] ss:$8 sps:$4 sm:$0xff]   ;;  %v2114_v54 = vld [vmem:[%s3022_s0 + $0x64] ss:$8 sps:$4 sm:$0xff]   ;;  %v2116_v55 = vld [vmem:[%s3022_s0 + $0x60] ss:$8 sps:$4 sm:$0xff]  }
  0x3c   :  { %407 = vmatprep.subr.bf16.mxu0 %v2063_v10  ;;  %v2117_v56 = vld [vmem:[%s3022_s0 + $0x74] ss:$8 sps:$4 sm:$0xff]   ;;  %v2119_v57 = vld [vmem:[%s3022_s0 + $0x70] ss:$8 sps:$4 sm:$0xff]   ;;  %v2132_v60 = vld [vmem:[#allocation5 + $0x48] sm:$0xff]  }
  0x3d   :  { %v2130_v58 = vld [vmem:[#allocation5 + $0x50] sm:$0xff]   ;;  %v2133_v61 = vld [vmem:[#allocation5 + $0x8] sm:$0xff]   ;;  %v2134_v62 = vld [vmem:[#allocation5 + $0x40] sm:$0xff]  }
  0x3e   :  { %1947 = vmatpush3.bf16.msra.mxu1 %v2127_v32  ;;  %v2131_v59 = vld [vmem:[#allocation5 + $0x10] sm:$0xff]   ;;  %v2135_v63 = vld [vmem:[#allocation5] sm:$0xff]   ;;  %v98_v2 = vld [vmem:[%s3023_s1 + $0x8] sm:$0xff] }
  0x3f   :  { %408 = vmatpush1.bf16.msra.mxu0 %v2065_v11  ;;  %1948 = vmatprep.subr.bf16.mxu1 %v2128_v34  ;;  %v97_v0 = vld [vmem:[%s3023_s1] sm:$0xff]  ;;  %v99_v1 = vld [vmem:[%s3023_s1 + $0x10] sm:$0xff]  ;;  %v100_v3 = vld [vmem:[%s3023_s1 + $0x18] sm:$0xff] }
  0x40   :  { %409 = vmatprep.subr.bf16.mxu0 %v2066_v12  ;;  %806 = vrot.lane.b32.xlu0 %v97_v0, %s2433_s20  ;;  %v101_v4 = vld [vmem:[%s3023_s1 + $0x20] sm:$0xff]  ;;  %v102_v5 = vld [vmem:[%s3023_s1 + $0x28] sm:$0xff]  ;;  %v103_v6 = vld [vmem:[%s3023_s1 + $0x30] sm:$0xff] }
  0x41   :  { %810 = vrot.lane.b32.xlu1 %v99_v1, %s2433_s20  ;;  %v104_v7 = vld [vmem:[%s3023_s1 + $0x38] sm:$0xff]  ;;  %v105_v8 = vld [vmem:[%s3023_s1 + $0x40] sm:$0xff]  ;;  %v106_v9 = vld [vmem:[%s3023_s1 + $0x48] sm:$0xff] }
  0x42   :  { %1949 = vmatpush3.bf16.msra.mxu1 %v2129_v36  ;;  %v107_v10 = vld [vmem:[%s3023_s1 + $0x50] sm:$0xff]  ;;  %v108_v11 = vld [vmem:[%s3023_s1 + $0x58] sm:$0xff]  ;;  %v109_v12 = vld [vmem:[%s3023_s1 + $0x60] sm:$0xff] }
  0x43   :  { %410 = vmatpush1.bf16.msra.mxu0 %v2068_v14  ;;  %1950 = vmatprep.subr.bf16.mxu1 %v2130_v58  ;;  %v110_v13 = vld [vmem:[%s3023_s1 + $0x68] sm:$0xff]  ;;  %v111_v14 = vld [vmem:[%s3023_s1 + $0x70] sm:$0xff]  ;;  %v145_v20 = vld [vmem:[%s3025_s3] sm:$0x3] }
  0x44   :  { %411 = vmatprep.subr.bf16.mxu0 %v2069_v15  ;;  %808 = vrot.lane.b32.xlu0 %v98_v2, %s2433_s20  ;;  %v112_v15 = vld [vmem:[%s3023_s1 + $0x78] sm:$0xff] }
  0x45   :  { %812 = vrot.lane.b32.xlu1 %v100_v3, %s2433_s20 }
  0x46   :  { %1951 = vmatpush3.bf16.msra.mxu1 %v2131_v59 }
  0x47   :  { %412 = vmatpush1.bf16.msra.mxu0 %v2071_v16  ;;  %1952 = vmatprep.subr.bf16.mxu1 %v2132_v60  ;;  %v147_v16 = vlaneseq }
  0x48   :  { %413 = vmatprep.subr.bf16.mxu0 %v2072_v17  ;;  %814 = vrot.lane.b32.xlu0 %v101_v4, %s2433_s20 }
  0x49   :  { %816 = vrot.lane.b32.xlu1 %v102_v5, %s2433_s20  ;;  %v148_v17 = vshrl.u32 %v147_v16, 7 }
  0x4a   :  { %1953 = vmatpush3.bf16.msra.mxu1 %v2133_v61 }
  0x4b   :  { %414 = vmatpush2.bf16.msra.mxu0 %v2074_v18  ;;  %1954 = vmatprep.subr.bf16.mxu1 %v2134_v62  ;;  %v2633_v18 = vsub.s32 1, %v148_v17 }
  0x4c   :  { %415 = vmatprep.subr.bf16.mxu0 %v2075_v19  ;;  %818 = vrot.lane.b32.xlu0 %v103_v6, %s2433_s20  ;;  %v2635_v19 = vsub.s32 0, %v148_v17 }
  0x4d   :  { %820 = vrot.lane.b32.xlu1 %v104_v7, %s2433_s20  ;;  %v2641_v22 = vrot.slane %v145_v20, %v2633_v18 }
  0x4e   :  { %1955 = vmatpush3.bf16.msra.mxu1 %v2135_v63 }
  0x4f   :  { %416 = vmatpush2.bf16.msra.mxu0 %v2077_v21 }
  0x50   :  { %417 = vmatprep.subr.bf16.mxu0 %v2078_v23  ;;  %822 = vrot.lane.b32.xlu0 %v105_v8, %s2433_s20  ;;  %v2644_v23 = vrot.slane %v145_v20, %v2635_v19 }
  0x51   :  { %824 = vrot.lane.b32.xlu1 %v106_v9, %s2433_s20 }
  0x53   :  { %418 = vmatpush2.bf16.msra.mxu0 %v2080_v27 }
  0x54   :  { %419 = vmatprep.subr.bf16.mxu0 %v2081_v28  ;;  %826 = vrot.lane.b32.xlu0 %v107_v10, %s2433_s20 }
  0x55   :  { %828 = vrot.lane.b32.xlu1 %v108_v11, %s2433_s20 }
  0x57   :  { %420 = vmatpush2.bf16.msra.mxu0 %v2083_v31 }
  0x58   :  { %421 = vmatprep.subr.bf16.mxu0 %v2084_v33  ;;  %830 = vrot.lane.b32.xlu0 %v109_v12, %s2433_s20 }
  0x59   :  { %832 = vrot.lane.b32.xlu1 %v110_v13, %s2433_s20 }
  0x5b   :  { %422 = vmatpush2.bf16.msra.mxu0 %v2086_v35 }
  0x5c   :  { %423 = vmatprep.subr.bf16.mxu0 %v2087_v37  ;;  %834 = vrot.lane.b32.xlu0 %v111_v14, %s2433_s20 }
  0x5d   :  { %836 = vrot.lane.b32.xlu1 %v112_v15, %s2433_s20 }
  0x5f   :  { %424 = vmatpush2.bf16.msra.mxu0 %v2089_v38 }
  0x60   :  { %425 = vmatprep.subr.bf16.mxu0 %v2090_v39 }
  0x63   :  { %426 = vmatpush2.bf16.msra.mxu0 %v2092_v40 }
  0x64   :  { %427 = vmatprep.subr.bf16.mxu0 %v2093_v41 }
  0x67   :  { %428 = vmatpush2.bf16.msra.mxu0 %v2095_v42 }
  0x6a   :  { %430 = vmatmul.mubr.bf16.vlgmr.msra.gmra.mxu0 %v2096_v43 }
  0x6b   :  { %439 = vmatprep.mubr.bf16.mxu0 %v2099_v44 }
  0x72   :  { %440 = vmatmul.mubr.bf16.gmra.mxu0 %v2101_v45 }
  0x73   :  { %449 = vmatprep.mubr.bf16.mxu0 %v2102_v46 }
  0x7a   :  { %450 = vmatmul.mubr.bf16.gmra.mxu0 %v2104_v47 }
  0x7b   :  { %459 = vmatprep.mubr.bf16.mxu0 %v2105_v48 }
  0x82   :  { %460 = vmatmul.mubr.bf16.gmra.mxu0 %v2107_v49 }
  0x83   :  { %469 = vmatprep.mubr.bf16.mxu0 %v2108_v50 }
  0x8a   :  { %470 = vmatmul.mubr.bf16.gmra.mxu0 %v2110_v51 }
  0x8b   :  { %479 = vmatprep.mubr.bf16.mxu0 %v2111_v52 }
  0x92   :  { %480 = vmatmul.mubr.bf16.gmra.mxu0 %v2113_v53 }
  0x93   :  { %489 = vmatprep.mubr.bf16.mxu0 %v2114_v54 }
  0x9a   :  { %490 = vmatmul.mubr.bf16.gmra.mxu0 %v2116_v55 }
  0x9b   :  { %499 = vmatprep.mubr.bf16.mxu0 %v2117_v56 }
  0xa2   :  { %500 = vmatmul.mubr.bf16.gmra.mxu0 %v2119_v57 }
 0x12a   :  { %v431_v21 = vpop.f32.mrf.mxu0 }
 0x12b   :  { %v432_v28 = vadd.f32 %v431_v21, %v2644_v23 }
 0x12c   :  { %v433_v24 = vpop.f32.mrf.mxu0 }
 0x12d   :  { %v434_v26 = vadd.f32 %v433_v24, %v2641_v22  ;;  %v510_v35 = vmax.f32 %v432_v28, 0.0 }
 0x12e   :  { %v435_v25 = vpop.f32.mrf.mxu0 }
 0x12f   :  { %v436_v27 = vadd.f32 %v435_v25, %v2644_v23  ;;  %v511_v33 = vmax.f32 %v434_v26, 0.0 }
 0x130   :  { %v437_v29 = vpop.f32.mrf.mxu0 }
 0x131   :  { %v438_v30 = vadd.f32 %v437_v29, %v2641_v22  ;;  %v512_v31 = vmax.f32 %v436_v27, 0.0 }
 0x132   :  { %v441_v32 = vpop.f32.mrf.mxu0 }
 0x133   :  { %v513_v34 = vmax.f32 %v438_v30, 0.0  ;;  %v542_v38 = vpack.c.bf16 %v512_v31, %v510_v35  ;;  %v442_v42 = vadd.f32 %v441_v32, %v2644_v23 }
 0x134   :  { %v443_v36 = vpop.f32.mrf.mxu0 }
 0x135   :  { %v543_v37 = vpack.c.bf16 %v513_v34, %v511_v33  ;;  %v444_v40 = vadd.f32 %v443_v36, %v2641_v22  ;;  %v514_v49 = vmax.f32 %v442_v42, 0.0 }
 0x136   :  { %v445_v39 = vpop.f32.mrf.mxu0 }
 0x137   :  { %v446_v41 = vadd.f32 %v445_v39, %v2644_v23  ;;  %725 = vmatprep.mubr.bf16.mxu1 %v543_v37  ;;  %v515_v47 = vmax.f32 %v444_v40, 0.0 }
 0x138   :  { %v447_v43 = vpop.f32.mrf.mxu0  ;;  %726 = vmatmul.mubr.bf16.vlgmr.msra.gmra.mxu1 %v542_v38 }
 0x139   :  { %v448_v44 = vadd.f32 %v447_v43, %v2641_v22  ;;  %v516_v45 = vmax.f32 %v446_v41, 0.0 }
 0x13a   :  { %v451_v46 = vpop.f32.mrf.mxu0 }
 0x13b   :  { %v517_v48 = vmax.f32 %v448_v44, 0.0  ;;  %v544_v52 = vpack.c.bf16 %v516_v45, %v514_v49  ;;  %v452_v56 = vadd.f32 %v451_v46, %v2644_v23 }
 0x13c   :  { %v453_v50 = vpop.f32.mrf.mxu0 }
 0x13d   :  { %v545_v51 = vpack.c.bf16 %v517_v48, %v515_v47  ;;  %v454_v54 = vadd.f32 %v453_v50, %v2641_v22  ;;  %v518_v63 = vmax.f32 %v452_v56, 0.0 }
 0x13e   :  { %v455_v53 = vpop.f32.mrf.mxu0 }
 0x13f   :  { %v456_v55 = vadd.f32 %v455_v53, %v2644_v23  ;;  %733 = vmatprep.mubr.bf16.mxu1 %v545_v51  ;;  %v519_v61 = vmax.f32 %v454_v54, 0.0 }
 0x140   :  { %v457_v57 = vpop.f32.mrf.mxu0  ;;  %734 = vmatmul.mubr.bf16.gmra.mxu1 %v544_v52 }
 0x141   :  { %v458_v58 = vadd.f32 %v457_v57, %v2641_v22  ;;  %v520_v59 = vmax.f32 %v456_v55, 0.0 }
 0x142   :  { %v461_v60 = vpop.f32.mrf.mxu0 }
 0x143   :  { %v521_v62 = vmax.f32 %v458_v58, 0.0  ;;  %v546_v2 = vpack.c.bf16 %v520_v59, %v518_v63  ;;  %v462_v6 = vadd.f32 %v461_v60, %v2644_v23 }
 0x144   :  { %v463_v0 = vpop.f32.mrf.mxu0 }
 0x145   :  { %v547_v1 = vpack.c.bf16 %v521_v62, %v519_v61  ;;  %v464_v4 = vadd.f32 %v463_v0, %v2641_v22  ;;  %v522_v13 = vmax.f32 %v462_v6, 0.0 }
 0x146   :  { %v465_v3 = vpop.f32.mrf.mxu0 }
 0x147   :  { %v466_v5 = vadd.f32 %v465_v3, %v2644_v23  ;;  %741 = vmatprep.mubr.bf16.mxu1 %v547_v1  ;;  %v523_v11 = vmax.f32 %v464_v4, 0.0 }
 0x148   :  { %v467_v7 = vpop.f32.mrf.mxu0  ;;  %742 = vmatmul.mubr.bf16.gmra.mxu1 %v546_v2 }
 0x149   :  { %v468_v8 = vadd.f32 %v467_v7, %v2641_v22  ;;  %v524_v9 = vmax.f32 %v466_v5, 0.0 }
 0x14a   :  { %v471_v10 = vpop.f32.mrf.mxu0 }
 0x14b   :  { %v525_v12 = vmax.f32 %v468_v8, 0.0  ;;  %v548_v16 = vpack.c.bf16 %v524_v9, %v522_v13  ;;  %v472_v24 = vadd.f32 %v471_v10, %v2644_v23  ;;  %v2144_v13 = vld [vmem:[%s3028_s6 + $0x14] ss:$8 sps:$4 sm:$0xff]  }
 0x14c   :  { %v473_v14 = vpop.f32.mrf.mxu0 }
 0x14d   :  { %v549_v15 = vpack.c.bf16 %v525_v12, %v523_v11  ;;  %v474_v20 = vadd.f32 %v473_v14, %v2641_v22  ;;  %v526_v31 = vmax.f32 %v472_v24, 0.0  ;;  %v2136_v11 = vld [vmem:[%s3028_s6 + $0x30] ss:$8 sps:$4 sm:$0xff]   ;;  %v2139_v12 = vld [vmem:[%s3028_s6 + $0x20] ss:$8 sps:$4 sm:$0xff]   ;;  %v807_v24 = vpop.permute.xlu0 %806 }
 0x14e   :  { %v475_v17 = vpop.f32.mrf.mxu0  ;;  %v2142_v14 = vld [vmem:[%s3028_s6 + $0x10] ss:$8 sps:$4 sm:$0xff]  }
 0x14f   :  { %v476_v21 = vadd.f32 %v475_v17, %v2644_v23  ;;  %749 = vmatprep.mubr.bf16.mxu1 %v549_v15  ;;  %v527_v29 = vmax.f32 %v474_v20, 0.0  ;;  %v2147_v15 = vld [vmem:[%s3028_s6 + $0x4] ss:$8 sps:$4 sm:$0xff]   ;;  %v2705_v20 = vld [vmem:[%s3027_s5] ss:$0 sm:$0xff] }
 0x150   :  { %v477_v25 = vpop.f32.mrf.mxu0  ;;  %750 = vmatmul.mubr.bf16.gmra.mxu1 %v548_v16  ;;  %v2145_v16 = vld [vmem:[%s3028_s6] ss:$8 sps:$4 sm:$0xff]  }
 0x151   :  { %v478_v26 = vadd.f32 %v477_v25, %v2641_v22  ;;  %v528_v27 = vmax.f32 %v476_v21, 0.0 }
 0x152   :  { %v481_v28 = vpop.f32.mrf.mxu0 }
 0x153   :  { %v529_v30 = vmax.f32 %v478_v26, 0.0  ;;  %v550_v34 = vpack.c.bf16 %v528_v27, %v526_v31  ;;  %v482_v38 = vadd.f32 %v481_v28, %v2644_v23  ;;  %v2439_v26 = vmov 0  }
 0x154   :  { %v483_v32 = vpop.f32.mrf.mxu0 }
 0x155   :  { %v551_v33 = vpack.c.bf16 %v529_v30, %v527_v29  ;;  %v484_v36 = vadd.f32 %v483_v32, %v2641_v22  ;;  %v530_v45 = vmax.f32 %v482_v38, 0.0 }
 0x156   :  { %v485_v35 = vpop.f32.mrf.mxu0 }
 0x157   :  { %v486_v37 = vadd.f32 %v485_v35, %v2644_v23  ;;  %757 = vmatprep.mubr.bf16.mxu1 %v551_v33  ;;  %v531_v43 = vmax.f32 %v484_v36, 0.0  ;;  %v809_v33 = vpop.permute.xlu0 %808  ;;  %v811_v36 = vpop.permute.xlu1 %810 }
 0x158   :  { %v487_v39 = vpop.f32.mrf.mxu0  ;;  %758 = vmatmul.mubr.bf16.gmra.mxu1 %v550_v34 }
 0x159   :  { %v488_v40 = vadd.f32 %v487_v39, %v2641_v22  ;;  %v532_v41 = vmax.f32 %v486_v37, 0.0 }
 0x15a   :  { %v491_v42 = vpop.f32.mrf.mxu0 }
 0x15b   :  { %v533_v44 = vmax.f32 %v488_v40, 0.0  ;;  %v552_v48 = vpack.c.bf16 %v532_v41, %v530_v45  ;;  %v492_v52 = vadd.f32 %v491_v42, %v2644_v23  ;;  %v813_v45 = vpop.permute.xlu1 %812 }
 0x15c   :  { %v493_v46 = vpop.f32.mrf.mxu0 }
 0x15d   :  { %v553_v47 = vpack.c.bf16 %v533_v44, %v531_v43  ;;  %v494_v50 = vadd.f32 %v493_v46, %v2641_v22  ;;  %v534_v59 = vmax.f32 %v492_v52, 0.0 }
 0x15e   :  { %v495_v49 = vpop.f32.mrf.mxu0 }
 0x15f   :  { %v496_v51 = vadd.f32 %v495_v49, %v2644_v23  ;;  %765 = vmatprep.mubr.bf16.mxu1 %v553_v47  ;;  %v535_v57 = vmax.f32 %v494_v50, 0.0 }
 0x160   :  { %v497_v53 = vpop.f32.mrf.mxu0  ;;  %766 = vmatmul.mubr.bf16.gmra.mxu1 %v552_v48 }
 0x161   :  { %v498_v54 = vadd.f32 %v497_v53, %v2641_v22  ;;  %v536_v55 = vmax.f32 %v496_v51, 0.0  ;;  %v815_v51 = vpop.permute.xlu0 %814 }
 0x162   :  { %v501_v56 = vpop.f32.mrf.mxu0 }
 0x163   :  { %v537_v58 = vmax.f32 %v498_v54, 0.0  ;;  %v554_v62 = vpack.c.bf16 %v536_v55, %v534_v59  ;;  %v502_v2 = vadd.f32 %v501_v56, %v2644_v23 }
 0x164   :  { %v503_v60 = vpop.f32.mrf.mxu0 }
 0x165   :  { %v555_v61 = vpack.c.bf16 %v537_v58, %v535_v57  ;;  %v504_v0 = vadd.f32 %v503_v60, %v2641_v22  ;;  %v538_v8 = vmax.f32 %v502_v2, 0.0  ;;  %v817_v57 = vpop.permute.xlu1 %816 }
 0x166   :  { %v505_v63 = vpop.f32.mrf.mxu0 }
 0x167   :  { %v506_v1 = vadd.f32 %v505_v63, %v2644_v23  ;;  %773 = vmatprep.mubr.bf16.mxu1 %v555_v61  ;;  %v539_v6 = vmax.f32 %v504_v0, 0.0  ;;  %v2138_v23 = vld [vmem:[%s3028_s6 + $0x34] ss:$8 sps:$4 sm:$0xff]   ;;  %v819_v63 = vpop.permute.xlu0 %818 }
 0x168   :  { %v507_v3 = vpop.f32.mrf.mxu0  ;;  %774 = vmatmul.mubr.bf16.gmra.mxu1 %v554_v62  ;;  %1051 = vmatprep.subr.bf16.mxu1 %v2138_v23 }
 0x169   :  { %v508_v4 = vadd.f32 %v507_v3, %v2641_v22  ;;  %v540_v5 = vmax.f32 %v506_v1, 0.0  ;;  %v2141_v22 = vld [vmem:[%s3028_s6 + $0x24] ss:$8 sps:$4 sm:$0xff]   ;;  %1052 = vmatpush1.bf16.msra.mxu1 %v2136_v11 }
 0x16a   :  { %1053 = vmatprep.subr.bf16.mxu1 %v2141_v22 }
 0x16b   :  { %v541_v7 = vmax.f32 %v508_v4, 0.0  ;;  %v556_v10 = vpack.c.bf16 %v540_v5, %v538_v8  ;;  %v821_v5 = vpop.permute.xlu1 %820  ;;  %v823_v11 = vpop.permute.xlu0 %822 }
 0x16d   :  { %v557_v9 = vpack.c.bf16 %v541_v7, %v539_v6  ;;  %1054 = vmatpush1.bf16.msra.mxu1 %v2139_v12 }
 0x16e   :  { %1055 = vmatprep.subr.bf16.mxu1 %v2144_v13 }
 0x16f   :  { %781 = vmatprep.mubr.bf16.mxu1 %v557_v9 }
 0x170   :  { %782 = vmatmul.mubr.bf16.gmra.mxu1 %v556_v10 }
 0x171   :  { %1056 = vmatpush1.bf16.msra.mxu1 %v2142_v14  ;;  %1075 = vmatprep.mubr.bf16.mxu1 %v2439_v26 }
 0x172   :  { %1057 = vmatprep.subr.bf16.mxu1 %v2147_v15  ;;  %v825_v15 = vpop.permute.xlu1 %824 }
 0x175   :  { %1058 = vmatpush1.bf16.msra.mxu1 %v2145_v16 }
 0x1f8   :  { %v1956_v17 = vpop.f32.mrf.mxu1 }
 0x1fa   :  { %v1957_v21 = vpop.f32.mrf.mxu1 }
 0x1fb   :  { %v1958_v25 = vadd.f32 %v1957_v21, %v1956_v17 }
 0x1fc   :  { %v1959_v27 = vpop.f32.mrf.mxu1 }
 0x1fd   :  { %v2709_v28 = vadd.f32 %v1958_v25, %v2705_v20 }
 0x1fe   :  { %v1960_v29 = vpop.f32.mrf.mxu1 }
 0x1ff   :  { %1745 = vst [vmem:[#allocation9] sm:$0xff] %v2709_v28  ;;  %v854_v30 = vmul.f32 %v807_v24, %v2709_v28  ;;  %v1961_v31 = vadd.f32 %v1960_v29, %v1959_v27  ;;  %v827_v27 = vpop.permute.xlu0 %826 }
 0x200   :  { %v1962_v32 = vpop.f32.mrf.mxu1 }
 0x201   :  { %v2714_v34 = vadd.f32 %v1961_v31, %v2705_v20  ;;  %886 = vrot.lane.b32.xlu0 %v854_v30, %s2433_s20 }
 0x202   :  { %v1963_v35 = vpop.f32.mrf.mxu1 }
 0x203   :  { %1746 = vst [vmem:[#allocation9 + $0x8] sm:$0xff] %v2714_v34  ;;  %v855_v37 = vmul.f32 %v809_v33, %v2714_v34  ;;  %v1964_v38 = vadd.f32 %v1963_v35, %v1962_v32  ;;  %v829_v35 = vpop.permute.xlu1 %828 }
 0x204   :  { %v1965_v39 = vpop.f32.mrf.mxu1 }
 0x205   :  { %v2720_v40 = vadd.f32 %v1964_v38, %v2705_v20  ;;  %888 = vrot.lane.b32.xlu1 %v855_v37, %s2433_s20 }
 0x206   :  { %v1966_v41 = vpop.f32.mrf.mxu1 }
 0x207   :  { %1747 = vst [vmem:[#allocation9 + $0x10] sm:$0xff] %v2720_v40  ;;  %v856_v42 = vmul.f32 %v811_v36, %v2720_v40  ;;  %v1967_v43 = vadd.f32 %v1966_v41, %v1965_v39 }
 0x208   :  { %v1968_v44 = vpop.f32.mrf.mxu1 }
 0x209   :  { %v2726_v46 = vadd.f32 %v1967_v43, %v2705_v20  ;;  %890 = vrot.lane.b32.xlu0 %v856_v42, %s2433_s20  ;;  %v831_v42 = vpop.permute.xlu0 %830 }
 0x20a   :  { %v1969_v47 = vpop.f32.mrf.mxu1 }
 0x20b   :  { %1748 = vst [vmem:[#allocation9 + $0x18] sm:$0xff] %v2726_v46  ;;  %v857_v48 = vmul.f32 %v813_v45, %v2726_v46  ;;  %v1970_v49 = vadd.f32 %v1969_v47, %v1968_v44 }
 0x20c   :  { %v1971_v50 = vpop.f32.mrf.mxu1 }
 0x20d   :  { %v2732_v52 = vadd.f32 %v1970_v49, %v2705_v20  ;;  %892 = vrot.lane.b32.xlu1 %v857_v48, %s2433_s20  ;;  %v833_v49 = vpop.permute.xlu1 %832 }
 0x20e   :  { %v1972_v53 = vpop.f32.mrf.mxu1 }
 0x20f   :  { %1749 = vst [vmem:[#allocation9 + $0x20] sm:$0xff] %v2732_v52  ;;  %v858_v54 = vmul.f32 %v815_v51, %v2732_v52  ;;  %v1973_v55 = vadd.f32 %v1972_v53, %v1971_v50 }
 0x210   :  { %v1974_v56 = vpop.f32.mrf.mxu1 }
 0x211   :  { %v2738_v58 = vadd.f32 %v1973_v55, %v2705_v20  ;;  %894 = vrot.lane.b32.xlu0 %v858_v54, %s2433_s20 }
 0x212   :  { %v1975_v59 = vpop.f32.mrf.mxu1 }
 0x213   :  { %1750 = vst [vmem:[#allocation9 + $0x28] sm:$0xff] %v2738_v58  ;;  %v859_v60 = vmul.f32 %v817_v57, %v2738_v58  ;;  %v1976_v61 = vadd.f32 %v1975_v59, %v1974_v56  ;;  %v835_v56 = vpop.permute.xlu0 %834  ;;  %v2791_v57 = vld [vmem:[#allocation7 + $0x70] ss:$8 sps:$4 sm:$0xff]   ;;  %v2150_v59 = vld [vmem:[#allocation7 + $0x74] ss:$8 sps:$4 sm:$0xff]  }
 0x214   :  { %v1977_v62 = vpop.f32.mrf.mxu1  ;;  %1408 = vmatprep.subr.bf16.mxu0 %v2150_v59  ;;  %2004 = vmatprep.subr.bf16.mxu1 %v2150_v59 }
 0x215   :  { %v2744_v0 = vadd.f32 %v1976_v61, %v2705_v20  ;;  %896 = vrot.lane.b32.xlu1 %v859_v60, %s2433_s20  ;;  %v2797_v61 = vld [vmem:[#allocation7 + $0x64] ss:$8 sps:$4 sm:$0xff]   ;;  %1409 = vmatpush1.bf16.msra.mxu0 %v2791_v57 }
 0x216   :  { %v1978_v1 = vpop.f32.mrf.mxu1  ;;  %1410 = vmatprep.subr.bf16.mxu0 %v2797_v61 }
 0x217   :  { %1751 = vst [vmem:[#allocation9 + $0x30] sm:$0xff] %v2744_v0  ;;  %v860_v2 = vmul.f32 %v819_v63, %v2744_v0  ;;  %v1979_v3 = vadd.f32 %v1978_v1, %v1977_v62 }
 0x218   :  { %v1980_v4 = vpop.f32.mrf.mxu1 }
 0x219   :  { %v2750_v6 = vadd.f32 %v1979_v3, %v2705_v20  ;;  %898 = vrot.lane.b32.xlu0 %v860_v2, %s2433_s20  ;;  %v2802_v2 = vld [vmem:[#allocation7 + $0x60] ss:$8 sps:$4 sm:$0xff]   ;;  %v837_v3 = vpop.permute.xlu1 %836 }
 0x21a   :  { %v1981_v7 = vpop.f32.mrf.mxu1  ;;  %1411 = vmatpush1.bf16.msra.mxu0 %v2802_v2 }
 0x21b   :  { %1752 = vst [vmem:[#allocation9 + $0x38] sm:$0xff] %v2750_v6  ;;  %v861_v8 = vmul.f32 %v821_v5, %v2750_v6  ;;  %v1982_v9 = vadd.f32 %v1981_v7, %v1980_v4  ;;  %v2805_v4 = vld [vmem:[#allocation7 + $0x54] ss:$8 sps:$4 sm:$0xff]  }
 0x21c   :  { %v1983_v10 = vpop.f32.mrf.mxu1  ;;  %1412 = vmatprep.subr.bf16.mxu0 %v2805_v4 }
 0x21d   :  { %v2756_v23 = vadd.f32 %v1982_v9, %v2705_v20  ;;  %900 = vrot.lane.b32.xlu1 %v861_v8, %s2433_s20  ;;  %v2814_v8 = vld [vmem:[#allocation7 + $0x50] ss:$8 sps:$4 sm:$0xff]   ;;  %v2159_v9 = vld [vmem:[#allocation7 + $0x44] ss:$8 sps:$4 sm:$0xff]  }
 0x21e   :  { %v1984_v22 = vpop.f32.mrf.mxu1  ;;  %1413 = vmatpush1.bf16.msra.mxu0 %v2814_v8 }
 0x21f   :  { %1753 = vst [vmem:[#allocation9 + $0x40] sm:$0xff] %v2756_v23  ;;  %v862_v12 = vmul.f32 %v823_v11, %v2756_v23  ;;  %v1985_v13 = vadd.f32 %v1984_v22, %v1983_v10  ;;  %v2819_v10 = vld [vmem:[#allocation7 + $0x40] ss:$8 sps:$4 sm:$0xff]   ;;  %1414 = vmatprep.subr.bf16.mxu0 %v2159_v9  ;;  %v2824_v11 = vld [vmem:[#allocation7 + $0x30] ss:$8 sps:$4 sm:$0xff]  }
 0x220   :  { %v1986_v14 = vpop.f32.mrf.mxu1  ;;  %v2827_v22 = vld [vmem:[#allocation7 + $0x24] ss:$8 sps:$4 sm:$0xff]  }
 0x221   :  { %v2762_v16 = vadd.f32 %v1985_v13, %v2705_v20  ;;  %902 = vrot.lane.b32.xlu0 %v862_v12, %s2433_s20  ;;  %v2830_v12 = vld [vmem:[#allocation7 + $0x20] ss:$8 sps:$4 sm:$0xff]   ;;  %v2833_v13 = vld [vmem:[#allocation7 + $0x14] ss:$8 sps:$4 sm:$0xff]  }
 0x222   :  { %v1987_v17 = vpop.f32.mrf.mxu1  ;;  %1415 = vmatpush1.bf16.msra.mxu0 %v2819_v10 }
 0x223   :  { %1754 = vst [vmem:[#allocation9 + $0x48] sm:$0xff] %v2762_v16  ;;  %v863_v21 = vmul.f32 %v825_v15, %v2762_v16  ;;  %v1988_v24 = vadd.f32 %v1987_v17, %v1986_v14  ;;  %v2836_v14 = vld [vmem:[#allocation7 + $0x10] ss:$8 sps:$4 sm:$0xff]   ;;  %v2839_v15 = vld [vmem:[#allocation7 + $0x4] ss:$8 sps:$4 sm:$0xff]  }
 0x224   :  { %v1989_v25 = vpop.f32.mrf.mxu1  ;;  %v2842_v17 = vld [vmem:[#allocation7] ss:$8 sps:$4 sm:$0xff]  }
 0x225   :  { %v2768_v29 = vadd.f32 %v1988_v24, %v2705_v20  ;;  %904 = vrot.lane.b32.xlu1 %v863_v21, %s2433_s20  ;;  %v2845_v21 = vld [vmem:[#allocation7 + $0xf4] ss:$8 sps:$4 sm:$0xff]   ;;  %v2848_v24 = vld [vmem:[#allocation7 + $0xf0] ss:$8 sps:$4 sm:$0xff]  }
 0x226   :  { %v1990_v30 = vpop.f32.mrf.mxu1 }
 0x227   :  { %1755 = vst [vmem:[#allocation9 + $0x50] sm:$0xff] %v2768_v29  ;;  %v864_v31 = vmul.f32 %v827_v27, %v2768_v29  ;;  %v1991_v32 = vadd.f32 %v1990_v30, %v1989_v25  ;;  %v2851_v25 = vld [vmem:[#allocation7 + $0xe4] ss:$8 sps:$4 sm:$0xff]   ;;  %v2854_v27 = vld [vmem:[#allocation7 + $0xe0] ss:$8 sps:$4 sm:$0xff]  }
 0x228   :  { %v1992_v33 = vpop.f32.mrf.mxu1  ;;  %v2857_v30 = vld [vmem:[#allocation7 + $0xd4] ss:$8 sps:$4 sm:$0xff]  }
 0x229   :  { %v2774_v36 = vadd.f32 %v1991_v32, %v2705_v20  ;;  %906 = vrot.lane.b32.xlu0 %v864_v31, %s2433_s20  ;;  %v2860_v31 = vld [vmem:[#allocation7 + $0xd0] ss:$8 sps:$4 sm:$0xff]   ;;  %v2863_v32 = vld [vmem:[#allocation7 + $0xc4] ss:$8 sps:$4 sm:$0xff]  }
 0x22a   :  { %v1993_v37 = vpop.f32.mrf.mxu1 }
 0x22b   :  { %1756 = vst [vmem:[#allocation9 + $0x58] sm:$0xff] %v2774_v36  ;;  %v865_v38 = vmul.f32 %v829_v35, %v2774_v36  ;;  %v1994_v39 = vadd.f32 %v1993_v37, %v1992_v33  ;;  %v2866_v33 = vld [vmem:[#allocation7 + $0xc0] ss:$8 sps:$4 sm:$0xff]   ;;  %v2869_v35 = vld [vmem:[#allocation7 + $0xb4] ss:$8 sps:$4 sm:$0xff]  }
 0x22c   :  { %v1995_v41 = vpop.f32.mrf.mxu1  ;;  %v2872_v37 = vld [vmem:[#allocation7 + $0xb0] ss:$8 sps:$4 sm:$0xff]  }
 0x22d   :  { %v2780_v43 = vadd.f32 %v1994_v39, %v2705_v20  ;;  %908 = vrot.lane.b32.xlu1 %v865_v38, %s2433_s20 }
 0x22e   :  { %v1996_v44 = vpop.f32.mrf.mxu1 }
 0x22f   :  { %1757 = vst [vmem:[#allocation9 + $0x60] sm:$0xff] %v2780_v43  ;;  %v866_v45 = vmul.f32 %v831_v42, %v2780_v43  ;;  %v1997_v47 = vadd.f32 %v1996_v44, %v1995_v41 }
 0x230   :  { %v1998_v48 = vpop.f32.mrf.mxu1 }
 0x231   :  { %v2786_v50 = vadd.f32 %v1997_v47, %v2705_v20  ;;  %910 = vrot.lane.b32.xlu0 %v866_v45, %s2433_s20 }
 0x232   :  { %v1999_v51 = vpop.f32.mrf.mxu1 }
 0x233   :  { %1758 = vst [vmem:[#allocation9 + $0x68] sm:$0xff] %v2786_v50  ;;  %v867_v53 = vmul.f32 %v833_v49, %v2786_v50  ;;  %v2000_v54 = vadd.f32 %v1999_v51, %v1998_v48 }
 0x234   :  { %v2001_v55 = vpop.f32.mrf.mxu1 }
 0x235   :  { %v2794_v60 = vadd.f32 %v2000_v54, %v2705_v20  ;;  %912 = vrot.lane.b32.xlu1 %v867_v53, %s2433_s20 }
 0x236   :  { %v2002_v62 = vpop.f32.mrf.mxu1 }
 0x237   :  { %1759 = vst [vmem:[#allocation9 + $0x70] sm:$0xff] %v2794_v60  ;;  %v868_v63 = vmul.f32 %v835_v56, %v2794_v60  ;;  %v2003_v1 = vadd.f32 %v2002_v62, %v2001_v55 }
 0x239   :  { %v2808_v5 = vadd.f32 %v2003_v1, %v2705_v20  ;;  %914 = vrot.lane.b32.xlu0 %v868_v63, %s2433_s20  ;;  %v2821_v20 = vld [vmem:[#allocation7 + $0x34] ss:$8 sps:$4 sm:$0xff]  }
 0x23a   :  { %1416 = vmatprep.subr.bf16.mxu0 %v2821_v20 }
 0x23b   :  { %1760 = vst [vmem:[#allocation9 + $0x78] sm:$0xff] %v2808_v5  ;;  %v869_v7 = vmul.f32 %v837_v3, %v2808_v5  ;;  %1417 = vmatpush1.bf16.msra.mxu0 %v2824_v11 }
 0x23c   :  { %1418 = vmatprep.subr.bf16.mxu0 %v2827_v22 }
 0x23d   :  { %916 = vrot.lane.b32.xlu1 %v869_v7, %s2433_s20 }
 0x23f   :  { %1419 = vmatpush1.bf16.msra.mxu0 %v2830_v12 }
 0x240   :  { %1420 = vmatprep.subr.bf16.mxu0 %v2833_v13 }
 0x243   :  { %1421 = vmatpush1.bf16.msra.mxu0 %v2836_v14 }
 0x244   :  { %1422 = vmatprep.subr.bf16.mxu0 %v2839_v15 }
 0x247   :  { %1423 = vmatpush1.bf16.msra.mxu0 %v2842_v17 }
 0x248   :  { %1424 = vmatprep.subr.bf16.mxu0 %v2845_v21 }
 0x24b   :  { %1425 = vmatpush2.bf16.msra.mxu0 %v2848_v24 }
 0x24c   :  { %1426 = vmatprep.subr.bf16.mxu0 %v2851_v25 }
 0x24f   :  { %1427 = vmatpush2.bf16.msra.mxu0 %v2854_v27 }
 0x250   :  { %1428 = vmatprep.subr.bf16.mxu0 %v2857_v30 }
 0x253   :  { %1429 = vmatpush2.bf16.msra.mxu0 %v2860_v31 }
 0x254   :  { %1430 = vmatprep.subr.bf16.mxu0 %v2863_v32 }
 0x257   :  { %1431 = vmatpush2.bf16.msra.mxu0 %v2866_v33 }
 0x258   :  { %1432 = vmatprep.subr.bf16.mxu0 %v2869_v35 }
 0x25b   :  { %1433 = vmatpush2.bf16.msra.mxu0 %v2872_v37 }
 0x273   :  { %v887_v38 = vpop.permute.xlu0 %886 }
 0x274   :  { %v934_v41 = vadd.f32 %v887_v38, %v2709_v28 }
 0x277   :  { %v889_v39 = vpop.permute.xlu1 %888 }
 0x278   :  { %v935_v42 = vadd.f32 %v889_v39, %v2714_v34 }
 0x27a   :  { %v950_v44 = vpack.c.bf16 %v935_v42, %v934_v41 }
 0x27b   :  { %v891_v45 = vpop.permute.xlu0 %890 }
 0x27c   :  { %1868 = vmatmul.mubr.msk.bf16.vlgmr.msra.gmra.mxu1 %vm1018_vm0, %v950_v44  ;;  %v936_v48 = vadd.f32 %v891_v45, %v2720_v40 }
 0x27d   :  { %1085 = vmatprep.mubr.bf16.mxu1 %v2439_v26  ;;  %2020 = vmatpush1.bf16.msra.mxu1 %v2791_v57 }
 0x27e   :  { %2005 = vmatprep.subr.bf16.mxu1 %v2797_v61 }
 0x27f   :  { %v893_v47 = vpop.permute.xlu1 %892 }
 0x280   :  { %v937_v49 = vadd.f32 %v893_v47, %v2726_v46 }
 0x281   :  { %2021 = vmatpush1.bf16.msra.mxu1 %v2802_v2 }
 0x282   :  { %v951_v28 = vpack.c.bf16 %v937_v49, %v936_v48  ;;  %2006 = vmatprep.subr.bf16.mxu1 %v2805_v4 }
 0x283   :  { %v895_v34 = vpop.permute.xlu0 %894 }
 0x284   :  { %1869 = vmatmul.mubr.msk.bf16.gmra.mxu1 %vm1018_vm0, %v951_v28  ;;  %v938_v53 = vadd.f32 %v895_v34, %v2732_v52 }
 0x285   :  { %1095 = vmatprep.mubr.bf16.mxu1 %v2439_v26  ;;  %2022 = vmatpush1.bf16.msra.mxu1 %v2814_v8 }
 0x286   :  { %2007 = vmatprep.subr.bf16.mxu1 %v2159_v9 }
 0x287   :  { %v897_v51 = vpop.permute.xlu1 %896 }
 0x288   :  { %v939_v40 = vadd.f32 %v897_v51, %v2738_v58 }
 0x289   :  { %2023 = vmatpush1.bf16.msra.mxu1 %v2819_v10 }
 0x28a   :  { %v952_v46 = vpack.c.bf16 %v939_v40, %v938_v53  ;;  %2008 = vmatprep.subr.bf16.mxu1 %v2821_v20  ;;  %v2187_v20 = vld [vmem:[#allocation7 + $0xa0] ss:$8 sps:$4 sm:$0xff]  }
 0x28b   :  { %v899_v54 = vpop.permute.xlu0 %898 }
 0x28c   :  { %1870 = vmatmul.mubr.msk.bf16.gmra.mxu1 %vm1018_vm0, %v952_v46  ;;  %v940_v56 = vadd.f32 %v899_v54, %v2744_v0 }
 0x28d   :  { %1105 = vmatprep.mubr.bf16.mxu1 %v2439_v26  ;;  %2024 = vmatpush1.bf16.msra.mxu1 %v2824_v11  ;;  %v2192_v11 = vld [vmem:[#allocation7 + $0x94] ss:$8 sps:$4 sm:$0xff]  }
 0x28e   :  { %2009 = vmatprep.subr.bf16.mxu1 %v2827_v22  ;;  %v2190_v22 = vld [vmem:[#allocation7 + $0x90] ss:$8 sps:$4 sm:$0xff]  }
 0x28f   :  { %v901_v55 = vpop.permute.xlu1 %900 }
 0x290   :  { %v941_v52 = vadd.f32 %v901_v55, %v2750_v6 }
 0x291   :  { %2025 = vmatpush1.bf16.msra.mxu1 %v2830_v12  ;;  %v2193_v12 = vld [vmem:[#allocation7 + $0x80] ss:$8 sps:$4 sm:$0xff]  }
 0x292   :  { %v953_v58 = vpack.c.bf16 %v941_v52, %v940_v56  ;;  %2010 = vmatprep.subr.bf16.mxu1 %v2833_v13 }
 0x293   :  { %v903_v57 = vpop.permute.xlu0 %902 }
 0x294   :  { %1871 = vmatmul.mubr.msk.bf16.gmra.mxu1 %vm1018_vm0, %v953_v58  ;;  %v942_v61 = vadd.f32 %v903_v57, %v2756_v23 }
 0x295   :  { %1115 = vmatprep.mubr.bf16.mxu1 %v2439_v26  ;;  %2026 = vmatpush1.bf16.msra.mxu1 %v2836_v14 }
 0x296   :  { %2011 = vmatprep.subr.bf16.mxu1 %v2839_v15 }
 0x297   :  { %v905_v59 = vpop.permute.xlu1 %904 }
 0x298   :  { %v943_v0 = vadd.f32 %v905_v59, %v2762_v16 }
 0x299   :  { %2027 = vmatpush1.bf16.msra.mxu1 %v2842_v17 }
 0x29a   :  { %v954_v6 = vpack.c.bf16 %v943_v0, %v942_v61  ;;  %2012 = vmatprep.subr.bf16.mxu1 %v2845_v21 }
 0x29b   :  { %v907_v62 = vpop.permute.xlu0 %906 }
 0x29c   :  { %1872 = vmatmul.mubr.msk.bf16.gmra.mxu1 %vm1018_vm0, %v954_v6  ;;  %v944_v1 = vadd.f32 %v907_v62, %v2768_v29 }
 0x29d   :  { %1125 = vmatprep.mubr.bf16.mxu1 %v2439_v26  ;;  %2028 = vmatpush2.bf16.msra.mxu1 %v2848_v24 }
 0x29e   :  { %2013 = vmatprep.subr.bf16.mxu1 %v2851_v25 }
 0x29f   :  { %v909_v63 = vpop.permute.xlu1 %908 }
 0x2a0   :  { %v945_v23 = vadd.f32 %v909_v63, %v2774_v36 }
 0x2a1   :  { %2029 = vmatpush2.bf16.msra.mxu1 %v2854_v27 }
 0x2a2   :  { %v955_v16 = vpack.c.bf16 %v945_v23, %v944_v1  ;;  %2014 = vmatprep.subr.bf16.mxu1 %v2857_v30 }
 0x2a3   :  { %v911_v2 = vpop.permute.xlu0 %910 }
 0x2a4   :  { %1873 = vmatmul.mubr.msk.bf16.gmra.mxu1 %vm1018_vm0, %v955_v16  ;;  %v946_v4 = vadd.f32 %v911_v2, %v2780_v43 }
 0x2a5   :  { %1135 = vmatprep.mubr.bf16.mxu1 %v2439_v26  ;;  %2030 = vmatpush2.bf16.msra.mxu1 %v2860_v31 }
 0x2a6   :  { %2015 = vmatprep.subr.bf16.mxu1 %v2863_v32 }
 0x2a7   :  { %v913_v3 = vpop.permute.xlu1 %912 }
 0x2a8   :  { %v947_v29 = vadd.f32 %v913_v3, %v2786_v50  ;;  %v2189_v50 = vld [vmem:[#allocation7 + $0xa4] ss:$8 sps:$4 sm:$0xff]  }
 0x2a9   :  { %2031 = vmatpush2.bf16.msra.mxu1 %v2866_v33  ;;  %1434 = vmatprep.subr.bf16.mxu0 %v2189_v50 }
 0x2aa   :  { %v956_v36 = vpack.c.bf16 %v947_v29, %v946_v4  ;;  %2016 = vmatprep.subr.bf16.mxu1 %v2869_v35  ;;  %1435 = vmatpush2.bf16.msra.mxu0 %v2187_v20 }
 0x2ab   :  { %v915_v7 = vpop.permute.xlu0 %914  ;;  %1436 = vmatprep.subr.bf16.mxu0 %v2192_v11 }
 0x2ac   :  { %1874 = vmatmul.mubr.msk.bf16.gmra.mxu1 %vm1018_vm0, %v956_v36  ;;  %v948_v9 = vadd.f32 %v915_v7, %v2794_v60  ;;  %v966_v60 = vld [vmem:[%s3029_s7] sm:$0x3]  ;;  %s2440_s7 = smov [#allocation9]  }
 0x2ad   :  { %1145 = vmatprep.mubr.bf16.mxu1 %v2439_v26  ;;  %2032 = vmatpush2.bf16.msra.mxu1 %v2872_v37  ;;  %v2195_v26 = vld [vmem:[#allocation7 + $0x84] ss:$8 sps:$4 sm:$0xff]   ;;  %v2935_v13 = vrot.slane %v966_v60, %v2633_v18  ;;  %v2938_v14 = vrot.slane %v966_v60, %v2635_v19  ;;  %s1778_s20 = sshll.u32 %s2440_s7, 4  ;;  %s1779_s20 = int_to_ptr.vmem [resolvable:$true] %s1778_s20 }
 0x2ae   :  { %2017 = vmatprep.subr.bf16.mxu1 %v2189_v50  ;;  %1437 = vmatpush2.bf16.msra.mxu0 %v2190_v22  ;;  %s2384_s17 = scalar_lea.vmem %s1779_s20, 2048  ;;  %p2389_p2 = scmp.lt.s32.totalorder %s1779_s20, %s1779_s20 }
 0x2af   :  { %v917_v8 = vpop.permute.xlu1 %916  ;;  %1438 = vmatprep.subr.bf16.mxu0 %v2195_v26  ;;  %p2385_p1 = scmp.ne.s32.totalorder %s1779_s20, %s2384_s17  ;;  %p2390_p3 = scmp.lt.s32.totalorder %s2384_s17, %s2384_s17 }
 0x2b0   :  { %v949_v10 = vadd.f32 %v917_v8, %v2808_v5 }
 0x2b1   :  { %2033 = vmatpush2.bf16.msra.mxu1 %v2187_v20  ;;  %p2391_p4 = por %p2390_p3, %p2389_p2 }
 0x2b2   :  { %v957_v43 = vpack.c.bf16 %v949_v10, %v948_v9  ;;  %2018 = vmatprep.subr.bf16.mxu1 %v2192_v11  ;;  %1439 = vmatpush2.bf16.msra.mxu0 %v2193_v12 }
 0x2b3   :  { %p2392_p5 = pnand %p2391_p4, %p2385_p1 }
 0x2b4   :  { %1875 = vmatmul.mubr.msk.bf16.gmra.mxu1 %vm1018_vm0, %v957_v43 }
 0x2b5   :  { %2034 = vmatpush2.bf16.msra.mxu1 %v2190_v22 }
 0x2b6   :  { %2019 = vmatprep.subr.bf16.mxu1 %v2195_v26 }
 0x2b9   :  { %2035 = vmatpush2.bf16.msra.mxu1 %v2193_v12 }
 0x33c   :  { %v1077_v5 = vpop.f32.mrf.mxu1 }
 0x33d   :  { %v1078_v25 = vadd.f32 %v1077_v5, %v2938_v14 }
 0x33e   :  { %v1079_v15 = vpop.f32.mrf.mxu1 }
 0x33f   :  { %v1080_v21 = vadd.f32 %v1079_v15, %v2935_v13  ;;  %v1156_v37 = vmax.f32 %v1078_v25, 0.0 }
 0x340   :  { %v1081_v17 = vpop.f32.mrf.mxu1 }
 0x341   :  { %v1082_v24 = vadd.f32 %v1081_v17, %v2938_v14  ;;  %v1157_v33 = vmax.f32 %v1080_v21, 0.0 }
 0x342   :  { %v1083_v27 = vpop.f32.mrf.mxu1 }
 0x343   :  { %v1084_v30 = vadd.f32 %v1083_v27, %v2935_v13  ;;  %v1158_v31 = vmax.f32 %v1082_v24, 0.0 }
 0x344   :  { %v1087_v32 = vpop.f32.mrf.mxu1 }
 0x345   :  { %v1159_v35 = vmax.f32 %v1084_v30, 0.0  ;;  %v1188_v41 = vpack.c.bf16 %v1158_v31, %v1156_v37  ;;  %v1088_v47 = vadd.f32 %v1087_v32, %v2938_v14 }
 0x346   :  { %v1089_v38 = vpop.f32.mrf.mxu1 }
 0x347   :  { %v1189_v39 = vpack.c.bf16 %v1159_v35, %v1157_v33  ;;  %v1090_v44 = vadd.f32 %v1089_v38, %v2935_v13  ;;  %v1160_v40 = vmax.f32 %v1088_v47, 0.0 }
 0x348   :  { %v1091_v42 = vpop.f32.mrf.mxu1 }
 0x349   :  { %v1092_v45 = vadd.f32 %v1091_v42, %v2938_v14  ;;  %1440 = vmatprep.mubr.bf16.mxu0 %v1189_v39  ;;  %v1161_v51 = vmax.f32 %v1090_v44, 0.0 }
 0x34a   :  { %v1093_v48 = vpop.f32.mrf.mxu1  ;;  %1441 = vmatmul.mubr.bf16.vlgmr.msra.gmra.mxu0 %v1188_v41 }
 0x34b   :  { %v1094_v49 = vadd.f32 %v1093_v48, %v2935_v13  ;;  %v1162_v28 = vmax.f32 %v1092_v45, 0.0 }
 0x34c   :  { %v1097_v34 = vpop.f32.mrf.mxu1 }
 0x34d   :  { %v1163_v53 = vmax.f32 %v1094_v49, 0.0  ;;  %v1190_v55 = vpack.c.bf16 %v1162_v28, %v1160_v40  ;;  %v1098_v57 = vadd.f32 %v1097_v34, %v2938_v14 }
 0x34e   :  { %v1099_v46 = vpop.f32.mrf.mxu1 }
 0x34f   :  { %v1191_v54 = vpack.c.bf16 %v1163_v53, %v1161_v51  ;;  %v1100_v52 = vadd.f32 %v1099_v46, %v2935_v13  ;;  %v1164_v1 = vmax.f32 %v1098_v57, 0.0 }
 0x350   :  { %v1101_v56 = vpop.f32.mrf.mxu1 }
 0x351   :  { %v1102_v58 = vadd.f32 %v1101_v56, %v2938_v14  ;;  %1450 = vmatprep.mubr.bf16.mxu0 %v1191_v54  ;;  %v1165_v62 = vmax.f32 %v1100_v52, 0.0 }
 0x352   :  { %v1103_v59 = vpop.f32.mrf.mxu1  ;;  %1451 = vmatmul.mubr.bf16.gmra.mxu0 %v1190_v55 }
 0x353   :  { %v1104_v61 = vadd.f32 %v1103_v59, %v2935_v13  ;;  %v1166_v0 = vmax.f32 %v1102_v58, 0.0 }
 0x354   :  { %v1107_v6 = vpop.f32.mrf.mxu1 }
 0x355   :  { %v1167_v63 = vmax.f32 %v1104_v61, 0.0  ;;  %v1192_v2 = vpack.c.bf16 %v1166_v0, %v1164_v1  ;;  %v1108_v36 = vadd.f32 %v1107_v6, %v2938_v14 }
 0x356   :  { %v1109_v23 = vpop.f32.mrf.mxu1 }
 0x357   :  { %v1193_v16 = vpack.c.bf16 %v1167_v63, %v1165_v62  ;;  %v1110_v4 = vadd.f32 %v1109_v23, %v2935_v13  ;;  %v1168_v20 = vmax.f32 %v1108_v36, 0.0 }
 0x358   :  { %v1111_v3 = vpop.f32.mrf.mxu1 }
 0x359   :  { %v1112_v29 = vadd.f32 %v1111_v3, %v2938_v14  ;;  %1460 = vmatprep.mubr.bf16.mxu0 %v1193_v16  ;;  %v1169_v43 = vmax.f32 %v1110_v4, 0.0 }
 0x35a   :  { %v1113_v7 = vpop.f32.mrf.mxu1  ;;  %1461 = vmatmul.mubr.bf16.gmra.mxu0 %v1192_v2 }
 0x35b   :  { %v1114_v8 = vadd.f32 %v1113_v7, %v2935_v13  ;;  %v1170_v9 = vmax.f32 %v1112_v29, 0.0 }
 0x35c   :  { %v1117_v10 = vpop.f32.mrf.mxu1 }
 0x35d   :  { %v1171_v50 = vmax.f32 %v1114_v8, 0.0  ;;  %v1194_v26 = vpack.c.bf16 %v1170_v9, %v1168_v20  ;;  %v1118_v15 = vadd.f32 %v1117_v10, %v2938_v14 }
 0x35e   :  { %v1119_v11 = vpop.f32.mrf.mxu1 }
 0x35f   :  { %v1195_v22 = vpack.c.bf16 %v1171_v50, %v1169_v43  ;;  %v1120_v60 = vadd.f32 %v1119_v11, %v2935_v13  ;;  %v1172_v31 = vmax.f32 %v1118_v15, 0.0 }
 0x360   :  { %v1121_v12 = vpop.f32.mrf.mxu1 }
 0x361   :  { %v1122_v5 = vadd.f32 %v1121_v12, %v2938_v14  ;;  %1470 = vmatprep.mubr.bf16.mxu0 %v1195_v22  ;;  %v1173_v27 = vmax.f32 %v1120_v60, 0.0 }
 0x362   :  { %v1123_v17 = vpop.f32.mrf.mxu1  ;;  %1471 = vmatmul.mubr.bf16.gmra.mxu0 %v1194_v26 }
 0x363   :  { %v1124_v21 = vadd.f32 %v1123_v17, %v2935_v13  ;;  %v1174_v24 = vmax.f32 %v1122_v5, 0.0 }
 0x364   :  { %v1127_v25 = vpop.f32.mrf.mxu1 }
 0x365   :  { %v1175_v30 = vmax.f32 %v1124_v21, 0.0  ;;  %v1196_v35 = vpack.c.bf16 %v1174_v24, %v1172_v31  ;;  %v1128_v41 = vadd.f32 %v1127_v25, %v2938_v14 }
 0x366   :  { %v1129_v32 = vpop.f32.mrf.mxu1 }
 0x367   :  { %v1197_v33 = vpack.c.bf16 %v1175_v30, %v1173_v27  ;;  %v1130_v38 = vadd.f32 %v1129_v32, %v2935_v13  ;;  %v1176_v28 = vmax.f32 %v1128_v41, 0.0 }
 0x368   :  { %v1131_v37 = vpop.f32.mrf.mxu1 }
 0x369   :  { %v1132_v39 = vadd.f32 %v1131_v37, %v2938_v14  ;;  %1480 = vmatprep.mubr.bf16.mxu0 %v1197_v33  ;;  %v1177_v48 = vmax.f32 %v1130_v38, 0.0 }
 0x36a   :  { %v1133_v42 = vpop.f32.mrf.mxu1  ;;  %1481 = vmatmul.mubr.bf16.gmra.mxu0 %v1196_v35 }
 0x36b   :  { %v1134_v44 = vadd.f32 %v1133_v42, %v2935_v13  ;;  %v1178_v45 = vmax.f32 %v1132_v39, 0.0 }
 0x36c   :  { %v1137_v47 = vpop.f32.mrf.mxu1 }
 0x36d   :  { %v1179_v49 = vmax.f32 %v1134_v44, 0.0  ;;  %v1198_v53 = vpack.c.bf16 %v1178_v45, %v1176_v28  ;;  %v1138_v55 = vadd.f32 %v1137_v47, %v2938_v14 }
 0x36e   :  { %v1139_v34 = vpop.f32.mrf.mxu1 }
 0x36f   :  { %v1199_v51 = vpack.c.bf16 %v1179_v49, %v1177_v48  ;;  %v1140_v46 = vadd.f32 %v1139_v34, %v2935_v13  ;;  %v1180_v0 = vmax.f32 %v1138_v55, 0.0 }
 0x370   :  { %v1141_v40 = vpop.f32.mrf.mxu1 }
 0x371   :  { %v1142_v54 = vadd.f32 %v1141_v40, %v2938_v14  ;;  %1490 = vmatprep.mubr.bf16.mxu0 %v1199_v51  ;;  %v1181_v59 = vmax.f32 %v1140_v46, 0.0 }
 0x372   :  { %v1143_v56 = vpop.f32.mrf.mxu1  ;;  %1491 = vmatmul.mubr.bf16.gmra.mxu0 %v1198_v53 }
 0x373   :  { %v1144_v52 = vadd.f32 %v1143_v56, %v2935_v13  ;;  %v1182_v58 = vmax.f32 %v1142_v54, 0.0 }
 0x374   :  { %v1147_v57 = vpop.f32.mrf.mxu1 }
 0x375   :  { %v1183_v61 = vmax.f32 %v1144_v52, 0.0  ;;  %v1200_v63 = vpack.c.bf16 %v1182_v58, %v1180_v0  ;;  %v1148_v2 = vadd.f32 %v1147_v57, %v2938_v14 }
 0x376   :  { %v1149_v6 = vpop.f32.mrf.mxu1 }
 0x377   :  { %v1201_v62 = vpack.c.bf16 %v1183_v61, %v1181_v59  ;;  %v1150_v23 = vadd.f32 %v1149_v6, %v2935_v13  ;;  %v1184_v8 = vmax.f32 %v1148_v2, 0.0 }
 0x378   :  { %v1151_v1 = vpop.f32.mrf.mxu1 }
 0x379   :  { %v1152_v16 = vadd.f32 %v1151_v1, %v2938_v14  ;;  %1500 = vmatprep.mubr.bf16.mxu1 %v1201_v62  ;;  %v1185_v36 = vmax.f32 %v1150_v23, 0.0 }
 0x37a   :  { %v1153_v3 = vpop.f32.mrf.mxu1  ;;  %1501 = vmatmul.mubr.bf16.vlgmr.msra.gmra.mxu1 %v1200_v63 }
 0x37b   :  { %v1154_v4 = vadd.f32 %v1153_v3, %v2935_v13  ;;  %v1186_v29 = vmax.f32 %v1152_v16, 0.0 }
 0x37d   :  { %v1187_v7 = vmax.f32 %v1154_v4, 0.0  ;;  %v1202_v10 = vpack.c.bf16 %v1186_v29, %v1184_v8 }
 0x37f   :  { %v1203_v9 = vpack.c.bf16 %v1187_v7, %v1185_v36 }
 0x381   :  { %1510 = vmatprep.mubr.bf16.mxu1 %v1203_v9 }
 0x382   :  { %1511 = vmatmul.mubr.bf16.gmra.mxu1 %v1202_v10 }
 0x383   :  { %2395 = shalt.err (!%p2392_p5)
}
 0x384   :  { %1784 = dma.vmem_to_hbm [thread:$0]  %s1779_s20, 2048, %s3033_s11, [#allocation10], %s2436_s27, %s2436_s27, %s2437_s28  }
 0x385   :  { %v1236_v13 = vld [vmem:[%s3031_s9] sm:$0x3]  ;;  %s2441_s9 = smov [#allocation8]  }
 0x386   :  { %v2982_v14 = vrot.slane %v1236_v13, %v2635_v19  ;;  %v2985_v43 = vrot.slane %v1236_v13, %v2633_v18  ;;  %s1766_s11 = sshll.u32 %s2441_s9, 4  ;;  %s1767_s11 = int_to_ptr.vmem [resolvable:$true] %s1766_s11 }
 0x387   :  { %s2404_s27 = scalar_lea.vmem %s1767_s11, 4096  ;;  %p2409_p7 = scmp.lt.s32.totalorder %s1767_s11, %s1767_s11 }
 0x388   :  { %p2405_p6 = scmp.ne.s32.totalorder %s1767_s11, %s2404_s27  ;;  %p2410_p8 = scmp.lt.s32.totalorder %s2404_s27, %s2404_s27 }
 0x38a   :  { %p2411_p9 = por %p2410_p8, %p2409_p7 }
 0x38c   :  { %p2412_p10 = pnand %p2411_p9, %p2405_p6 }
 0x40a   :  { %v1442_v50 = vpop.f32.mrf.mxu0 }
 0x40b   :  { %v1443_v20 = vadd.f32 %v1442_v50, %v2982_v14 }
 0x40c   :  { %v1444_v11 = vpop.f32.mrf.mxu0 }
 0x40d   :  { %v1908_v22 = vmul.f32 -1.442695, %v1443_v20  ;;  %v1445_v26 = vadd.f32 %v1444_v11, %v2985_v43 }
 0x40e   :  { %v1446_v12 = vpop.f32.mrf.mxu0 }
 0x40f   :  { %2196 = vpow2.f32 %v1908_v22  ;;  %v1909_v60 = vmul.f32 -1.442695, %v1445_v26  ;;  %v1447_v5 = vadd.f32 %v1446_v12, %v2982_v14 }
 0x410   :  { %v1448_v15 = vpop.f32.mrf.mxu0 }
 0x411   :  { %2198 = vpow2.f32 %v1909_v60  ;;  %v1910_v17 = vmul.f32 -1.442695, %v1447_v5  ;;  %v1449_v19 = vadd.f32 %v1448_v15, %v2985_v43 }
 0x412   :  { %v1452_v21 = vpop.f32.mrf.mxu0 }
 0x413   :  { %2200 = vpow2.f32 %v1910_v17  ;;  %v1911_v18 = vmul.f32 -1.442695, %v1449_v19  ;;  %v1453_v24 = vadd.f32 %v1452_v21, %v2982_v14 }
 0x414   :  { %v1454_v25 = vpop.f32.mrf.mxu0 }
 0x415   :  { %2202 = vpow2.f32 %v1911_v18  ;;  %v1912_v27 = vmul.f32 -1.442695, %v1453_v24  ;;  %v1455_v30 = vadd.f32 %v1454_v25, %v2985_v43 }
 0x416   :  { %v1456_v31 = vpop.f32.mrf.mxu0 }
 0x417   :  { %2204 = vpow2.f32 %v1912_v27  ;;  %v1913_v32 = vmul.f32 -1.442695, %v1455_v30  ;;  %v1457_v33 = vadd.f32 %v1456_v31, %v2982_v14 }
 0x418   :  { %v1458_v35 = vpop.f32.mrf.mxu0 }
 0x419   :  { %2206 = vpow2.f32 %v1913_v32  ;;  %v1914_v37 = vmul.f32 -1.442695, %v1457_v33  ;;  %v1459_v38 = vadd.f32 %v1458_v35, %v2985_v43 }
 0x41a   :  { %v1462_v39 = vpop.f32.mrf.mxu0 }
 0x41b   :  { %2208 = vpow2.f32 %v1914_v37  ;;  %v1915_v41 = vmul.f32 -1.442695, %v1459_v38  ;;  %v1463_v42 = vadd.f32 %v1462_v39, %v2982_v14 }
 0x41c   :  { %v2197_v44 = vpop.eup %2196  ;;  %v1464_v45 = vpop.f32.mrf.mxu0 }
 0x41d   :  { %v1617_v47 = vadd.f32 1.0, %v2197_v44  ;;  %2210 = vpow2.f32 %v1915_v41  ;;  %v1916_v48 = vmul.f32 -1.442695, %v1463_v42  ;;  %v1465_v49 = vadd.f32 %v1464_v45, %v2985_v43 }
 0x41e   :  { %v2199_v28 = vpop.eup %2198  ;;  %v1466_v34 = vpop.f32.mrf.mxu0 }
 0x41f   :  { %2212 = vrcp.f32 %v1617_v47  ;;  %v1618_v51 = vadd.f32 1.0, %v2199_v28  ;;  %v1917_v53 = vmul.f32 -1.442695, %v1465_v49  ;;  %v1467_v40 = vadd.f32 %v1466_v34, %v2982_v14 }
 0x420   :  { %v2201_v46 = vpop.eup %2200  ;;  %2214 = vpow2.f32 %v1916_v48  ;;  %v1468_v54 = vpop.f32.mrf.mxu0 }
 0x421   :  { %2216 = vrcp.f32 %v1618_v51  ;;  %v1619_v55 = vadd.f32 1.0, %v2201_v46  ;;  %v1918_v56 = vmul.f32 -1.442695, %v1467_v40  ;;  %v1469_v52 = vadd.f32 %v1468_v54, %v2985_v43 }
 0x422   :  { %v2203_v58 = vpop.eup %2202  ;;  %2218 = vpow2.f32 %v1917_v53  ;;  %v1472_v57 = vpop.f32.mrf.mxu0 }
 0x423   :  { %2220 = vrcp.f32 %v1619_v55  ;;  %v1620_v59 = vadd.f32 1.0, %v2203_v58  ;;  %v1919_v61 = vmul.f32 -1.442695, %v1469_v52  ;;  %v1473_v0 = vadd.f32 %v1472_v57, %v2982_v14 }
 0x424   :  { %v2205_v6 = vpop.eup %2204  ;;  %2222 = vpow2.f32 %v1918_v56  ;;  %v1474_v62 = vpop.f32.mrf.mxu0 }
 0x425   :  { %2224 = vrcp.f32 %v1620_v59  ;;  %v1621_v63 = vadd.f32 1.0, %v2205_v6  ;;  %v1920_v1 = vmul.f32 -1.442695, %v1473_v0  ;;  %v1475_v23 = vadd.f32 %v1474_v62, %v2985_v43 }
 0x426   :  { %v2207_v16 = vpop.eup %2206  ;;  %2226 = vpow2.f32 %v1919_v61  ;;  %v1476_v2 = vpop.f32.mrf.mxu0 }
 0x427   :  { %2228 = vrcp.f32 %v1621_v63  ;;  %v1622_v3 = vadd.f32 1.0, %v2207_v16  ;;  %v1921_v4 = vmul.f32 -1.442695, %v1475_v23  ;;  %v1477_v29 = vadd.f32 %v1476_v2, %v2982_v14 }
 0x428   :  { %v2209_v36 = vpop.eup %2208  ;;  %2230 = vpow2.f32 %v1920_v1  ;;  %v1478_v7 = vpop.f32.mrf.mxu0 }
 0x429   :  { %2232 = vrcp.f32 %v1622_v3  ;;  %v1623_v8 = vadd.f32 1.0, %v2209_v36  ;;  %v1922_v9 = vmul.f32 -1.442695, %v1477_v29  ;;  %v1479_v10 = vadd.f32 %v1478_v7, %v2985_v43 }
 0x42a   :  { %v2211_v13 = vpop.eup %2210  ;;  %2234 = vpow2.f32 %v1921_v4  ;;  %v1482_v50 = vpop.f32.mrf.mxu0 }
 0x42b   :  { %2236 = vrcp.f32 %v1623_v8  ;;  %v1624_v20 = vadd.f32 1.0, %v2211_v13  ;;  %v1923_v11 = vmul.f32 -1.442695, %v1479_v10  ;;  %v1483_v22 = vadd.f32 %v1482_v50, %v2982_v14 }
 0x42c   :  { %v2213_v26 = vpop.eup %2212  ;;  %2238 = vpow2.f32 %v1922_v9  ;;  %v1484_v12 = vpop.f32.mrf.mxu0 }
 0x42d   :  { %v2215_v60 = vpop.eup %2214  ;;  %1713 = vst [vmem:[#allocation8] sm:$0xff] %v2213_v26  ;;  %2240 = vrcp.f32 %v1624_v20  ;;  %v1924_v5 = vmul.f32 -1.442695, %v1483_v22  ;;  %v1485_v15 = vadd.f32 %v1484_v12, %v2985_v43 }
 0x42e   :  { %v2217_v17 = vpop.eup %2216  ;;  %v1625_v19 = vadd.f32 1.0, %v2215_v60  ;;  %2242 = vpow2.f32 %v1923_v11  ;;  %v1486_v21 = vpop.f32.mrf.mxu0 }
 0x42f   :  { %v2219_v18 = vpop.eup %2218  ;;  %1714 = vst [vmem:[#allocation8 + $0x8] sm:$0xff] %v2217_v17  ;;  %2244 = vpow2.f32 %v1924_v5  ;;  %v1925_v24 = vmul.f32 -1.442695, %v1485_v15  ;;  %v1487_v25 = vadd.f32 %v1486_v21, %v2982_v14 }
 0x430   :  { %v2221_v27 = vpop.eup %2220  ;;  %2246 = vrcp.f32 %v1625_v19  ;;  %v1626_v30 = vadd.f32 1.0, %v2219_v18  ;;  %v1488_v31 = vpop.f32.mrf.mxu0 }
 0x431   :  { %v2223_v32 = vpop.eup %2222  ;;  %1715 = vst [vmem:[#allocation8 + $0x10] sm:$0xff] %v2221_v27  ;;  %2248 = vpow2.f32 %v1925_v24  ;;  %v1926_v33 = vmul.f32 -1.442695, %v1487_v25  ;;  %v1489_v35 = vadd.f32 %v1488_v31, %v2985_v43 }
 0x432   :  { %v2225_v37 = vpop.eup %2224  ;;  %2250 = vrcp.f32 %v1626_v30  ;;  %v1627_v38 = vadd.f32 1.0, %v2223_v32  ;;  %v1492_v39 = vpop.f32.mrf.mxu0 }
 0x433   :  { %v2227_v41 = vpop.eup %2226  ;;  %1716 = vst [vmem:[#allocation8 + $0x18] sm:$0xff] %v2225_v37  ;;  %2252 = vpow2.f32 %v1926_v33  ;;  %v1927_v42 = vmul.f32 -1.442695, %v1489_v35  ;;  %v1493_v44 = vadd.f32 %v1492_v39, %v2982_v14 }
 0x434   :  { %v2229_v45 = vpop.eup %2228  ;;  %2254 = vrcp.f32 %v1627_v38  ;;  %v1628_v47 = vadd.f32 1.0, %v2227_v41  ;;  %v1494_v48 = vpop.f32.mrf.mxu0 }
 0x435   :  { %v2231_v49 = vpop.eup %2230  ;;  %1717 = vst [vmem:[#allocation8 + $0x20] sm:$0xff] %v2229_v45  ;;  %2256 = vpow2.f32 %v1927_v42  ;;  %v1928_v28 = vmul.f32 -1.442695, %v1493_v44  ;;  %v1495_v34 = vadd.f32 %v1494_v48, %v2985_v43 }
 0x436   :  { %v2233_v51 = vpop.eup %2232  ;;  %2258 = vrcp.f32 %v1628_v47  ;;  %v1629_v53 = vadd.f32 1.0, %v2231_v49  ;;  %v1496_v40 = vpop.f32.mrf.mxu0 }
 0x437   :  { %v2235_v46 = vpop.eup %2234  ;;  %1718 = vst [vmem:[#allocation8 + $0x28] sm:$0xff] %v2233_v51  ;;  %2260 = vpow2.f32 %v1928_v28  ;;  %v1929_v54 = vmul.f32 -1.442695, %v1495_v34  ;;  %v1497_v55 = vadd.f32 %v1496_v40, %v2982_v14 }
 0x438   :  { %v2237_v56 = vpop.eup %2236  ;;  %2262 = vrcp.f32 %v1629_v53  ;;  %v1630_v52 = vadd.f32 1.0, %v2235_v46  ;;  %v1498_v58 = vpop.f32.mrf.mxu0 }
 0x439   :  { %v2239_v57 = vpop.eup %2238  ;;  %1719 = vst [vmem:[#allocation8 + $0x30] sm:$0xff] %v2237_v56  ;;  %2264 = vpow2.f32 %v1929_v54  ;;  %v1930_v59 = vmul.f32 -1.442695, %v1497_v55  ;;  %v1499_v61 = vadd.f32 %v1498_v58, %v2985_v43 }
 0x43a   :  { %v2241_v0 = vpop.eup %2240  ;;  %2266 = vrcp.f32 %v1630_v52  ;;  %v1631_v6 = vadd.f32 1.0, %v2239_v57  ;;  %v1502_v62 = vpop.f32.mrf.mxu1 }
 0x43b   :  { %v2243_v63 = vpop.eup %2242  ;;  %1720 = vst [vmem:[#allocation8 + $0x38] sm:$0xff] %v2241_v0  ;;  %2268 = vpow2.f32 %v1930_v59  ;;  %v1931_v1 = vmul.f32 -1.442695, %v1499_v61  ;;  %v1503_v23 = vadd.f32 %v1502_v62, %v2982_v14 }
 0x43c   :  { %v2245_v16 = vpop.eup %2244  ;;  %2270 = vrcp.f32 %v1631_v6  ;;  %v1632_v2 = vadd.f32 1.0, %v2243_v63  ;;  %v1504_v3 = vpop.f32.mrf.mxu1 }
 0x43d   :  { %v2247_v4 = vpop.eup %2246  ;;  %v1633_v29 = vadd.f32 1.0, %v2245_v16  ;;  %2272 = vpow2.f32 %v1931_v1  ;;  %v1932_v36 = vmul.f32 -1.442695, %v1503_v23  ;;  %v1505_v7 = vadd.f32 %v1504_v3, %v2985_v43 }
 0x43e   :  { %v2249_v8 = vpop.eup %2248  ;;  %1721 = vst [vmem:[#allocation8 + $0x40] sm:$0xff] %v2247_v4  ;;  %2274 = vrcp.f32 %v1632_v2  ;;  %v1506_v9 = vpop.f32.mrf.mxu1 }
 0x43f   :  { %v2251_v10 = vpop.eup %2250  ;;  %2276 = vrcp.f32 %v1633_v29  ;;  %v1634_v13 = vadd.f32 1.0, %v2249_v8  ;;  %v1933_v50 = vmul.f32 -1.442695, %v1505_v7  ;;  %v1507_v20 = vadd.f32 %v1506_v9, %v2982_v14 }
 0x440   :  { %v2253_v11 = vpop.eup %2252  ;;  %1722 = vst [vmem:[#allocation8 + $0x48] sm:$0xff] %v2251_v10  ;;  %2278 = vpow2.f32 %v1932_v36  ;;  %v1508_v22 = vpop.f32.mrf.mxu1 }
 0x441   :  { %v2255_v26 = vpop.eup %2254  ;;  %2280 = vrcp.f32 %v1634_v13  ;;  %v1635_v12 = vadd.f32 1.0, %v2253_v11  ;;  %v1934_v60 = vmul.f32 -1.442695, %v1507_v20  ;;  %v1509_v5 = vadd.f32 %v1508_v22, %v2985_v43 }
 0x442   :  { %v2257_v15 = vpop.eup %2256  ;;  %1723 = vst [vmem:[#allocation8 + $0x50] sm:$0xff] %v2255_v26  ;;  %2282 = vpow2.f32 %v1933_v50  ;;  %v1512_v17 = vpop.f32.mrf.mxu1 }
 0x443   :  { %v2259_v19 = vpop.eup %2258  ;;  %2284 = vrcp.f32 %v1635_v12  ;;  %v1636_v21 = vadd.f32 1.0, %v2257_v15  ;;  %v1935_v18 = vmul.f32 -1.442695, %v1509_v5  ;;  %v1513_v24 = vadd.f32 %v1512_v17, %v2982_v14 }
 0x444   :  { %v2261_v25 = vpop.eup %2260  ;;  %1724 = vst [vmem:[#allocation8 + $0x58] sm:$0xff] %v2259_v19  ;;  %2286 = vpow2.f32 %v1934_v60  ;;  %v1514_v27 = vpop.f32.mrf.mxu1 }
 0x445   :  { %v2263_v30 = vpop.eup %2262  ;;  %2288 = vrcp.f32 %v1636_v21  ;;  %v1637_v31 = vadd.f32 1.0, %v2261_v25  ;;  %v1936_v32 = vmul.f32 -1.442695, %v1513_v24  ;;  %v1515_v33 = vadd.f32 %v1514_v27, %v2985_v43 }
 0x446   :  { %v2265_v35 = vpop.eup %2264  ;;  %1725 = vst [vmem:[#allocation8 + $0x60] sm:$0xff] %v2263_v30  ;;  %2290 = vpow2.f32 %v1935_v18  ;;  %v1516_v37 = vpop.f32.mrf.mxu1 }
 0x447   :  { %v2267_v38 = vpop.eup %2266  ;;  %2292 = vrcp.f32 %v1637_v31  ;;  %v1638_v39 = vadd.f32 1.0, %v2265_v35  ;;  %v1937_v41 = vmul.f32 -1.442695, %v1515_v33  ;;  %v1517_v42 = vadd.f32 %v1516_v37, %v2982_v14 }
 0x448   :  { %v2269_v44 = vpop.eup %2268  ;;  %1726 = vst [vmem:[#allocation8 + $0x68] sm:$0xff] %v2267_v38  ;;  %2294 = vpow2.f32 %v1936_v32  ;;  %v1518_v45 = vpop.f32.mrf.mxu1 }
 0x449   :  { %v2271_v47 = vpop.eup %2270  ;;  %2296 = vrcp.f32 %v1638_v39  ;;  %v1639_v48 = vadd.f32 1.0, %v2269_v44  ;;  %v1938_v49 = vmul.f32 -1.442695, %v1517_v42  ;;  %v1519_v28 = vadd.f32 %v1518_v45, %v2985_v43 }
 0x44a   :  { %v2273_v34 = vpop.eup %2272  ;;  %1727 = vst [vmem:[#allocation8 + $0x70] sm:$0xff] %v2271_v47  ;;  %2298 = vpow2.f32 %v1937_v41 }
 0x44b   :  { %v2275_v51 = vpop.eup %2274  ;;  %2300 = vrcp.f32 %v1639_v48  ;;  %v1640_v53 = vadd.f32 1.0, %v2273_v34  ;;  %v1939_v40 = vmul.f32 -1.442695, %v1519_v28 }
 0x44c   :  { %v2277_v46 = vpop.eup %2276  ;;  %1728 = vst [vmem:[#allocation8 + $0x78] sm:$0xff] %v2275_v51  ;;  %2302 = vpow2.f32 %v1938_v49 }
 0x44d   :  { %v2279_v14 = vpop.eup %2278  ;;  %1729 = vst [vmem:[#allocation8 + $0x80] sm:$0xff] %v2277_v46  ;;  %2304 = vrcp.f32 %v1640_v53 }
 0x44e   :  { %v2281_v54 = vpop.eup %2280  ;;  %v1641_v55 = vadd.f32 1.0, %v2279_v14  ;;  %2306 = vpow2.f32 %v1939_v40 }
 0x44f   :  { %v2283_v56 = vpop.eup %2282  ;;  %1730 = vst [vmem:[#allocation8 + $0x88] sm:$0xff] %v2281_v54 }
 0x450   :  { %v2285_v52 = vpop.eup %2284  ;;  %2308 = vrcp.f32 %v1641_v55  ;;  %v1642_v43 = vadd.f32 1.0, %v2283_v56 }
 0x451   :  { %v2287_v58 = vpop.eup %2286  ;;  %1731 = vst [vmem:[#allocation8 + $0x90] sm:$0xff] %v2285_v52 }
 0x452   :  { %v2289_v57 = vpop.eup %2288  ;;  %2310 = vrcp.f32 %v1642_v43  ;;  %v1643_v59 = vadd.f32 1.0, %v2287_v58 }
 0x453   :  { %v2291_v61 = vpop.eup %2290  ;;  %1732 = vst [vmem:[#allocation8 + $0x98] sm:$0xff] %v2289_v57 }
 0x454   :  { %v2293_v0 = vpop.eup %2292  ;;  %2312 = vrcp.f32 %v1643_v59  ;;  %v1644_v6 = vadd.f32 1.0, %v2291_v61 }
 0x455   :  { %v2295_v62 = vpop.eup %2294  ;;  %1733 = vst [vmem:[#allocation8 + $0xa0] sm:$0xff] %v2293_v0 }
 0x456   :  { %v2297_v63 = vpop.eup %2296  ;;  %2314 = vrcp.f32 %v1644_v6  ;;  %v1645_v1 = vadd.f32 1.0, %v2295_v62 }
 0x457   :  { %v2299_v23 = vpop.eup %2298  ;;  %1734 = vst [vmem:[#allocation8 + $0xa8] sm:$0xff] %v2297_v63 }
 0x458   :  { %v2301_v16 = vpop.eup %2300  ;;  %2316 = vrcp.f32 %v1645_v1  ;;  %v1646_v2 = vadd.f32 1.0, %v2299_v23 }
 0x459   :  { %v2303_v3 = vpop.eup %2302  ;;  %1735 = vst [vmem:[#allocation8 + $0xb0] sm:$0xff] %v2301_v16 }
 0x45a   :  { %v2305_v4 = vpop.eup %2304  ;;  %2318 = vrcp.f32 %v1646_v2  ;;  %v1647_v29 = vadd.f32 1.0, %v2303_v3 }
 0x45b   :  { %v2307_v36 = vpop.eup %2306  ;;  %1736 = vst [vmem:[#allocation8 + $0xb8] sm:$0xff] %v2305_v4 }
 0x45c   :  { %2320 = vrcp.f32 %v1647_v29  ;;  %v1648_v7 = vadd.f32 1.0, %v2307_v36 }
 0x45d   :  { %v2309_v8 = vpop.eup %2308 }
 0x45e   :  { %1737 = vst [vmem:[#allocation8 + $0xc0] sm:$0xff] %v2309_v8  ;;  %2322 = vrcp.f32 %v1648_v7 }
 0x45f   :  { %v2311_v9 = vpop.eup %2310 }
 0x460   :  { %1738 = vst [vmem:[#allocation8 + $0xc8] sm:$0xff] %v2311_v9 }
 0x461   :  { %v2313_v10 = vpop.eup %2312 }
 0x462   :  { %1739 = vst [vmem:[#allocation8 + $0xd0] sm:$0xff] %v2313_v10 }
 0x463   :  { %v2315_v13 = vpop.eup %2314 }
 0x464   :  { %1740 = vst [vmem:[#allocation8 + $0xd8] sm:$0xff] %v2315_v13 }
 0x465   :  { %v2317_v50 = vpop.eup %2316 }
 0x466   :  { %1741 = vst [vmem:[#allocation8 + $0xe0] sm:$0xff] %v2317_v50 }
 0x467   :  { %v2319_v20 = vpop.eup %2318 }
 0x468   :  { %1742 = vst [vmem:[#allocation8 + $0xe8] sm:$0xff] %v2319_v20 }
 0x469   :  { %v2321_v11 = vpop.eup %2320 }
 0x46a   :  { %1743 = vst [vmem:[#allocation8 + $0xf0] sm:$0xff] %v2321_v11 }
 0x46b   :  { %v2323_v22 = vpop.eup %2322 }
 0x46c   :  { %1744 = vst [vmem:[#allocation8 + $0xf8] sm:$0xff] %v2323_v22 }
 0x46d   :  { %2415 = shalt.err (!%p2412_p10)
}
 0x46e   :  { %s2442_s28 = smov 256   ;;  %s2443_s3 = smov 16  }
 0x46f   :  { %1772 = dma.vmem_to_hbm [thread:$0]  %s1767_s11, 4096, %s3032_s10, [#allocation4], %s2442_s28, %s2442_s28, %s2443_s3  }
 0x470   :  { %2428 = dma.done.wait [#allocation4], 4096  }
 0x471   :  { %2429 = vsyncadd [#allocation4], 4294963200 }
 0x472   :  { %2430 = dma.done.wait [#allocation10], 2048  }
 0x473   :  { %2431 = vsyncadd [#allocation10], 4294965248 }
 0x474   :  { %1791 = vsyncpa [#allocation3], 1 }
 0x475   :  { %1792 = vsyncpa [#allocation6], 1 }
 0x476   :  { %1793 = vsyncpa [#allocation4], 1 }
 0x477   :  { %1794 = vsyncpa [#allocation10], 1 }

</bundles_post_ra>
